<compile_context>
chip_gen: v5e
topology: v5e:2x2
jax: 0.10.0
libtpu: 0.0.40
codegen_flags: <defaults>
</compile_context>

<pallas_src>
import functools

import jax
import jax.numpy as jnp
from jax.experimental import pallas as pl
from jax.experimental.pallas import tpu as pltpu


def _mm(x, w):
    """MXU matmul: cast activation to the weight dtype (bf16 path), accumulate in f32."""
    return jnp.dot(x.astype(w.dtype), w, preferred_element_type=jnp.float32)


# ----------------------------------------------------------------------------
# Fused kernel. Grid = (num_vocab_tiles,), "arbitrary".
#   scalar prefetch: ids [B] int32 (SMEM)
#   inputs : h [B,H], cap [B,Ncap,Dc], img [B,Nimg,Di], emb table [V,E] (HBM/ANY),
#            per-attention Wk [D,A], Wq [H,A], b [1,A] (=b_k+b_q), v [1,A],
#            GRU wih_e [3,E,H], wih_i [3,Di,H], wih_c [3,Dc,H], whh [3,H,H],
#            bih [3,1,H], bhh [3,1,H]  (gate order r, z, n),
#            wout tile [H,TV], bout tile [1,TV]
#   outputs: h_new [B,H], logp [B,V] (VMEM-resident across the grid), attn_img [B,Nimg]
#   scratch: emb_buf [B,E], DMA sems [B], h carry [B,H], lse running max/sum [B,1]
# ----------------------------------------------------------------------------
def _fused_decoder_kernel(ids_ref,
                          h_ref, cap_ref, img_ref, emb_hbm,
                          wki_ref, wqi_ref, bi_ref, vi_ref,
                          wkc_ref, wqc_ref, bc_ref, vc_ref,
                          wih_e_ref, wih_i_ref, wih_c_ref,
                          whh_ref, bih_ref, bhh_ref,
                          wout_ref, bout_ref,
                          hnew_ref, logp_ref, attn_ref,
                          emb_buf, gather_sem, h_scr, m_scr, s_scr):
    j = pl.program_id(0)
    B, H = h_ref.shape
    TV = wout_ref.shape[1]

    # ---------------- vocab tile 0: gather + attentions + GRU (once) ----------------
    @pl.when(j == 0)
    def _prologue():
        # (1) Embedding row gather: DMA only the B addressed rows out of the HBM table.
        def row_copy(b):
            return pltpu.make_async_copy(
                emb_hbm.at[pl.ds(ids_ref[b], 1)],       # [1, E] in HBM
                emb_buf.at[pl.ds(b, 1)],                # [1, E] in VMEM
                gather_sem.at[b])
        for b in range(B):                              # B is small & static
            row_copy(b).start()
        for b in range(B):
            row_copy(b).wait()

        h = h_ref[...].astype(jnp.float32)              # [B, H]
        emb = emb_buf[...]                              # [B, E]; dropout == identity (eval)

        # (2) Additive (Bahdanau) attention, whole batch, lane-dense scores.
        def attend(k3, wk_ref, wq_ref, b_ref, v_ref):
            Bk, N, D = k3.shape
            A = wk_ref.shape[1]
            kW = _mm(k3.reshape(Bk * N, D), wk_ref[...]).reshape(Bk, N, A)
            qW = _mm(h, wq_ref[...]) + b_ref[...].astype(jnp.float32)       # [B, A]
            e = jnp.tanh(kW + qW[:, None, :])                               # [B, N, A] (f32)
            scores = jnp.sum(e * v_ref[...].astype(jnp.float32), axis=-1)   # [B, N] lane reduce
            m = jnp.max(scores, axis=-1, keepdims=True)
            p = jnp.exp(scores - m)
            a = p / jnp.sum(p, axis=-1, keepdims=True)                      # softmax on lanes
            ctx = jnp.sum(a[:, :, None] * k3, axis=1)                       # VPU mul + XLU reduce
            return ctx, a

        ctx_img, a_img = attend(img_ref[...], wki_ref, wqi_ref, bi_ref, vi_ref)
        ctx_cap, _ = attend(cap_ref[...], wkc_ref, wqc_ref, bc_ref, vc_ref)

        # (3) GRU cell; W_ih split along the input dim (no concat), gates on leading axis.
        def gate(g):
            gi = (_mm(emb, wih_e_ref[g]) + _mm(ctx_img, wih_i_ref[g])
                  + _mm(ctx_cap, wih_c_ref[g]) + bih_ref[g].astype(jnp.float32))
            gh = _mm(h, whh_ref[g]) + bhh_ref[g].astype(jnp.float32)
            return gi, gh

        gi_r, gh_r = gate(0)
        gi_z, gh_z = gate(1)
        gi_n, gh_n = gate(2)
        r = jax.nn.sigmoid(gi_r + gh_r)
        z = jax.nn.sigmoid(gi_z + gh_z)
        n = jnp.tanh(gi_n + r * gh_n)
        h_new = (1.0 - z) * n + z * h                                       # [B, H]

        h_scr[...] = h_new
        hnew_ref[...] = h_new
        attn_ref[...] = a_img
        m_scr[...] = jnp.full(m_scr.shape, -jnp.inf, dtype=jnp.float32)
        s_scr[...] = jnp.zeros(s_scr.shape, dtype=jnp.float32)

    # ---------- every vocab tile: one slab of logits + streaming logsumexp ----------
    h_new = h_scr[...]
    logits = _mm(h_new, wout_ref[...]) + bout_ref[...].astype(jnp.float32)  # [B, TV]
    col = pl.multiple_of(j * TV, TV)
    logp_ref[:, pl.ds(col, TV)] = logits                                    # resident [B, V] block

    m_prev = m_scr[...]
    m_new = jnp.maximum(m_prev, jnp.max(logits, axis=-1, keepdims=True))
    s_scr[...] = (s_scr[...] * jnp.exp(m_prev - m_new)
                  + jnp.sum(jnp.exp(logits - m_new), axis=-1, keepdims=True))
    m_scr[...] = m_new

    @pl.when(j == pl.num_programs(0) - 1)
    def _epilogue():
        lse = m_scr[...] + jnp.log(s_scr[...])
        logp_ref[...] = logp_ref[...] - lse           # logits are VMEM-resident -> cheap 2nd pass


def _pick_vocab_tile(V, requested=None):
    if requested is not None:
        assert V % requested == 0, "vocab tile must divide vocab size"
        return requested
    for t in (2048, 1024, 512, 256, 128):
        if V % t == 0:
            return t
    return V


def fused_decoder_step(ids, h, cap_enc, img_enc, params, *, v_block=None):
    B, H = h.shape
    emb_tbl = params["embedding"]
    V, E = emb_tbl.shape
    wout, bout = params["out"]
    Ncap, Dc = cap_enc.shape[1], cap_enc.shape[2]
    Nimg, Di = img_enc.shape[1], img_enc.shape[2]
    Ai = params["img_attn"][0].shape[1]
    Ac = params["cap_attn"][0].shape[1]

    TV = _pick_vocab_tile(V, v_block)
    nvt = V // TV

    cidx2 = lambda j, ids_ref: (0, 0)
    cidx3 = lambda j, ids_ref: (0, 0, 0)

    in_specs = [
        pl.BlockSpec((B, H), cidx2),                 # h
        pl.BlockSpec((B, Ncap, Dc), cidx3),          # caption encoder outputs
        pl.BlockSpec((B, Nimg, Di), cidx3),          # image encoder outputs
        pl.BlockSpec(memory_space=pl.ANY),           # embedding table stays in HBM
        pl.BlockSpec((Di, Ai), cidx2),               # img attn Wk
        pl.BlockSpec((H, Ai), cidx2),                # img attn Wq
        pl.BlockSpec((1, Ai), cidx2),                # img attn bias
        pl.BlockSpec((1, Ai), cidx2),                # img attn v
        pl.BlockSpec((Dc, Ac), cidx2),               # cap attn Wk
        pl.BlockSpec((H, Ac), cidx2),                # cap attn Wq
        pl.BlockSpec((1, Ac), cidx2),                # cap attn bias
        pl.BlockSpec((1, Ac), cidx2),                # cap attn v
        pl.BlockSpec((3, E, H), cidx3),              # GRU W_ih (emb part)
        pl.BlockSpec((3, Di, H), cidx3),             # GRU W_ih (img-ctx part)
        pl.BlockSpec((3, Dc, H), cidx3),             # GRU W_ih (cap-ctx part)
        pl.BlockSpec((3, H, H), cidx3),              # GRU W_hh
        pl.BlockSpec((3, 1, H), cidx3),              # GRU b_ih
        pl.BlockSpec((3, 1, H), cidx3),              # GRU b_hh
        pl.BlockSpec((H, TV), lambda j, ids_ref: (0, j)),   # W_out vocab tile (streamed)
        pl.BlockSpec((1, TV), lambda j, ids_ref: (0, j)),   # b_out vocab tile
    ]
    out_specs = (
        pl.BlockSpec((B, H), cidx2),                 # h_new
        pl.BlockSpec((B, V), cidx2),                 # log-probs: resident across vocab tiles
        pl.BlockSpec((B, Nimg), cidx2),              # image attention weights
    )
    scratch_shapes = [
        pltpu.VMEM((B, E), emb_tbl.dtype),           # gathered embedding rows
        pltpu.SemaphoreType.DMA((B,)),               # gather semaphores
        pltpu.VMEM((B, H), jnp.float32),             # h_new carry across vocab tiles
        pltpu.VMEM((B, 1), jnp.float32),             # running max   (logsumexp)
        pltpu.VMEM((B, 1), jnp.float32),             # running sumexp(logsumexp)
    ]

    # Advisory cost estimate for XLA's scheduler.
    flops = 2 * (B * (Nimg * Di * Ai + H * Ai + Nimg * Ai + Nimg * Di)
                 + B * (Ncap * Dc * Ac + H * Ac + Ncap * Ac + Ncap * Dc)
                 + 3 * B * H * (E + Di + Dc + H)
                 + B * H * V)
    transc = B * (Nimg * Ai + Ncap * Ac + Nimg + Ncap + 3 * H + V)
    itm = lambda a: a.dtype.itemsize
    w_bytes = (B * E * itm(emb_tbl)
               + sum(int(w.size) * itm(w) for w in params["img_attn"])
               + sum(int(w.size) * itm(w) for w in params["cap_attn"])
               + sum(int(w.size) * itm(w) for w in params["gru"])
               + sum(int(w.size) * itm(w) for w in params["out"]))
    io_bytes = (int(ids.size) * 4 + int(h.size) * 4
                + int(cap_enc.size) * itm(cap_enc) + int(img_enc.size) * itm(img_enc)
                + B * H * 4 + B * V * 4 + B * Nimg * 4)
    cost = pl.CostEstimate(flops=int(flops), transcendentals=int(transc),
                           bytes_accessed=int(w_bytes + io_bytes))

    grid_spec = pltpu.PrefetchScalarGridSpec(
        num_scalar_prefetch=1,                       # ids -> SMEM, passed to index_maps + kernel
        grid=(nvt,),
        in_specs=in_specs,
        out_specs=out_specs,
        scratch_shapes=scratch_shapes,
    )
    return pl.pallas_call(
        _fused_decoder_kernel,
        grid_spec=grid_spec,
        out_shape=(jax.ShapeDtypeStruct((B, H), jnp.float32),
                   jax.ShapeDtypeStruct((B, V), jnp.float32),
                   jax.ShapeDtypeStruct((B, Nimg), jnp.float32)),
        compiler_params=pltpu.CompilerParams(
            dimension_semantics=("arbitrary",),      # vocab axis carries the online logsumexp
            vmem_limit_bytes=64 * 1024 * 1024),
        cost_estimate=cost,
    )(ids, h, cap_enc, img_enc, emb_tbl,
      *params["img_attn"], *params["cap_attn"], *params["gru"], *params["out"])


# ----------------------------------------------------------------------------
# Parameters + forward (dropout = identity at eval time; deep_out=False)
# ----------------------------------------------------------------------------
def init_params(key, *, hid_dim, emb_dim, out_dim, img_ctx_dim, cap_ctx_dim,
                img_attn_dim, cap_attn_dim, dtype=jnp.float32):
    ks = jax.random.split(key, 17)
    s = 0.1

    def rnd(k, shape):
        return (s * jax.random.normal(k, shape, jnp.float32)).astype(dtype)

    return {
        "embedding": rnd(ks[0], (out_dim, emb_dim)),
        "img_attn": (rnd(ks[1], (img_ctx_dim, img_attn_dim)),   # Wk
                     rnd(ks[2], (hid_dim, img_attn_dim)),       # Wq
                     rnd(ks[3], (1, img_attn_dim)),             # b_k + b_q
                     rnd(ks[4], (1, img_attn_dim))),            # scoring vector v
        "cap_attn": (rnd(ks[5], (cap_ctx_dim, cap_attn_dim)),
                     rnd(ks[6], (hid_dim, cap_attn_dim)),
                     rnd(ks[7], (1, cap_attn_dim)),
                     rnd(ks[8], (1, cap_attn_dim))),
        "gru": (rnd(ks[9], (3, emb_dim, hid_dim)),              # W_ih^T, emb rows, gates (r,z,n)
                rnd(ks[10], (3, img_ctx_dim, hid_dim)),         # W_ih^T, img-ctx rows
                rnd(ks[11], (3, cap_ctx_dim, hid_dim)),         # W_ih^T, cap-ctx rows
                rnd(ks[12], (3, hid_dim, hid_dim)),             # W_hh^T
                rnd(ks[13], (3, 1, hid_dim)),                   # b_ih
                rnd(ks[14], (3, 1, hid_dim))),                  # b_hh
        "out": (rnd(ks[15], (hid_dim, out_dim)),                # W_out^T
                rnd(ks[16], (1, out_dim))),                     # b_out
    }


def attention_decoder_forward(params, input_ids, hidden, cap_enc, img_enc, v_block=None):
    """input_ids: [1,B,1] int32, hidden: [1,B,H], cap_enc: [B,Ncap,Dc], img_enc: [B,Nimg,Di]."""
    B = hidden.shape[1]
    V = params["out"][0].shape[1]
    ids = jnp.clip(input_ids.reshape(B).astype(jnp.int32), 0, V - 1)   # guard the DMA gather
    h_new, logp, a = fused_decoder_step(ids, hidden[0], cap_enc, img_enc, params,
                                        v_block=v_block)
    return logp[None], h_new[None], a              # [1,B,out], [1,B,H], [B,Nimg]


# ----------------------------------------------------------------------------
# Pure-JAX reference (same math) for correctness checks.
# ----------------------------------------------------------------------------
def reference_forward(params, input_ids, hidden, cap_enc, img_enc):
    f32 = lambda w: w.astype(jnp.float32)
    emb_tbl = f32(params["embedding"])
    B = hidden.shape[1]
    ids = input_ids.reshape(B)
    o = emb_tbl[ids]                                                   # [B, E]
    q = hidden[0]

    def attend(K, Wk, Wq, b, v):
        Wk, Wq, b, v = f32(Wk), f32(Wq), f32(b), f32(v)
        e = jnp.tanh(jnp.einsum("bnk,kh->bnh", K, Wk) + (q @ Wq + b)[:, None, :])
        s = jnp.sum(e * v, axis=-1)
        a = jax.nn.softmax(s, axis=-1)
        ctx = jnp.einsum("bn,bnk->bk", a, K)
        return ctx, a

    ctx_img, a = attend(img_enc, *params["img_attn"])
    ctx_cap, _ = attend(cap_enc, *params["cap_attn"])
    wih_e, wih_i, wih_c, whh, bih, bhh = (f32(w) for w in params["gru"])

    def gate(g):
        gi = o @ wih_e[g] + ctx_img @ wih_i[g] + ctx_cap @ wih_c[g] + bih[g]
        gh = q @ whh[g] + bhh[g]
        return gi, gh

    gi_r, gh_r = gate(0)
    gi_z, gh_z = gate(1)
    gi_n, gh_n = gate(2)
    r = jax.nn.sigmoid(gi_r + gh_r)
    z = jax.nn.sigmoid(gi_z + gh_z)
    n = jnp.tanh(gi_n + r * gh_n)
    h_new = (1.0 - z) * n + z * q
    W_out, b_out = (f32(w) for w in params["out"])
    logp = jax.nn.log_softmax(h_new @ W_out + b_out, axis=-1)
    return logp[None], h_new[None], a


if __name__ == "__main__":
    B = 2
    hid_dim = 32
    emb_dim = 16
    out_dim = 256          # vocab; tiled as 2 x 128 to exercise the streaming logsumexp
    img_ctx_dim = 16
    cap_ctx_dim = 16
    img_attn_dim = 32
    cap_attn_dim = 32
    n_img = 8
    n_cap = 8

    key = jax.random.PRNGKey(0)
    kp, k1, k2, k3, k4 = jax.random.split(key, 5)
    params = init_params(kp, hid_dim=hid_dim, emb_dim=emb_dim, out_dim=out_dim,
                         img_ctx_dim=img_ctx_dim, cap_ctx_dim=cap_ctx_dim,
                         img_attn_dim=img_attn_dim, cap_attn_dim=cap_attn_dim,
                         dtype=jnp.float32)

    input_ids = jax.random.randint(k1, (1, B, 1), 0, out_dim, dtype=jnp.int32)
    hidden = 0.1 * jax.random.normal(k2, (1, B, hid_dim), jnp.float32)
    cap_enc = jax.random.normal(k3, (B, n_cap, cap_ctx_dim), jnp.float32)
    img_enc = jax.random.normal(k4, (B, n_img, img_ctx_dim), jnp.float32)

    fwd = jax.jit(functools.partial(attention_decoder_forward, v_block=128))

    # --- f32 weights: strict check against the pure-JAX reference ---
    logp, h, a = fwd(params, input_ids, hidden, cap_enc, img_enc)
    jax.block_until_ready((logp, h, a))
    logp_r, h_r, a_r = reference_forward(params, input_ids, hidden, cap_enc, img_enc)
    assert logp.shape == (1, B, out_dim) and h.shape == (1, B, hid_dim) and a.shape == (B, n_img)
    assert jnp.allclose(logp, logp_r, atol=5e-4), "log-probs mismatch (f32)"
    assert jnp.allclose(h, h_r, atol=5e-4), "hidden mismatch (f32)"
    assert jnp.allclose(a, a_r, atol=5e-4), "attention mismatch (f32)"

    # --- bf16 weights (HBM-bandwidth optimization path): loose check ---
    params_bf16 = jax.tree_util.tree_map(lambda w: w.astype(jnp.bfloat16), params)
    logp_b, h_b, a_b = fwd(params_bf16, input_ids, hidden, cap_enc, img_enc)
    jax.block_until_ready((logp_b, h_b, a_b))
    logp_br, h_br, a_br = reference_forward(params_bf16, input_ids, hidden, cap_enc, img_enc)
    assert jnp.allclose(logp_b, logp_br, atol=3e-2), "log-probs mismatch (bf16)"
    assert jnp.allclose(h_b, h_br, atol=3e-2), "hidden mismatch (bf16)"
    assert jnp.allclose(a_b, a_br, atol=3e-2), "attention mismatch (bf16)"

    print("KERNEL_OK")
</pallas_src>

<mosaic_0001>
module attributes {stable_mosaic.version = 11 : i64} {
  func.func @_fused_decoder_kernel(%arg0: i32, %arg1: memref<2xi32, #tpu.memory_space<smem>>, %arg2: memref<2x32xf32, #tpu.memory_space<vmem>>, %arg3: memref<2x8x16xf32, #tpu.memory_space<vmem>>, %arg4: memref<2x8x16xf32, #tpu.memory_space<vmem>>, %arg5: memref<256x16xf32, #tpu.memory_space<any>>, %arg6: memref<16x32xf32, #tpu.memory_space<vmem>>, %arg7: memref<32x32xf32, #tpu.memory_space<vmem>>, %arg8: memref<1x32xf32, #tpu.memory_space<vmem>>, %arg9: memref<1x32xf32, #tpu.memory_space<vmem>>, %arg10: memref<16x32xf32, #tpu.memory_space<vmem>>, %arg11: memref<32x32xf32, #tpu.memory_space<vmem>>, %arg12: memref<1x32xf32, #tpu.memory_space<vmem>>, %arg13: memref<1x32xf32, #tpu.memory_space<vmem>>, %arg14: memref<3x16x32xf32, #tpu.memory_space<vmem>>, %arg15: memref<3x16x32xf32, #tpu.memory_space<vmem>>, %arg16: memref<3x16x32xf32, #tpu.memory_space<vmem>>, %arg17: memref<3x32x32xf32, #tpu.memory_space<vmem>>, %arg18: memref<3x1x32xf32, #tpu.memory_space<vmem>>, %arg19: memref<3x1x32xf32, #tpu.memory_space<vmem>>, %arg20: memref<32x128xf32, #tpu.memory_space<vmem>>, %arg21: memref<1x128xf32, #tpu.memory_space<vmem>>, %arg22: memref<2x32xf32, #tpu.memory_space<vmem>>, %arg23: memref<2x256xf32, #tpu.memory_space<vmem>>, %arg24: memref<2x8xf32, #tpu.memory_space<vmem>>, %arg25: memref<2x16xf32, #tpu.memory_space<vmem>>, %arg26: memref<2x!tpu.dma_semaphore, #tpu.memory_space<semaphore_mem>>, %arg27: memref<2x32xf32, #tpu.memory_space<vmem>>, %arg28: memref<2x1xf32, #tpu.memory_space<vmem>>, %arg29: memref<2x1xf32, #tpu.memory_space<vmem>>) attributes {dimension_semantics = [#tpu.dimension_semantics<arbitrary>], iteration_bounds = array<i64: 2>, scalar_prefetch = 1 : i64, scratch_operands = 5 : i64, tpu.core_type = #tpu.core_type<tc>, window_params = [{pipeline_mode = #tpu.pipeline_mode<synchronous>, transform_indices = @transform_0, window_bounds = array<i64: 2, 32>}, {pipeline_mode = #tpu.pipeline_mode<synchronous>, transform_indices = @transform_1, window_bounds = array<i64: 2, 8, 16>}, {pipeline_mode = #tpu.pipeline_mode<synchronous>, transform_indices = @transform_2, window_bounds = array<i64: 2, 8, 16>}, {}, {pipeline_mode = #tpu.pipeline_mode<synchronous>, transform_indices = @transform_4, window_bounds = array<i64: 16, 32>}, {pipeline_mode = #tpu.pipeline_mode<synchronous>, transform_indices = @transform_5, window_bounds = array<i64: 32, 32>}, {pipeline_mode = #tpu.pipeline_mode<synchronous>, transform_indices = @transform_6, window_bounds = array<i64: 1, 32>}, {pipeline_mode = #tpu.pipeline_mode<synchronous>, transform_indices = @transform_7, window_bounds = array<i64: 1, 32>}, {pipeline_mode = #tpu.pipeline_mode<synchronous>, transform_indices = @transform_8, window_bounds = array<i64: 16, 32>}, {pipeline_mode = #tpu.pipeline_mode<synchronous>, transform_indices = @transform_9, window_bounds = array<i64: 32, 32>}, {pipeline_mode = #tpu.pipeline_mode<synchronous>, transform_indices = @transform_10, window_bounds = array<i64: 1, 32>}, {pipeline_mode = #tpu.pipeline_mode<synchronous>, transform_indices = @transform_11, window_bounds = array<i64: 1, 32>}, {pipeline_mode = #tpu.pipeline_mode<synchronous>, transform_indices = @transform_12, window_bounds = array<i64: 3, 16, 32>}, {pipeline_mode = #tpu.pipeline_mode<synchronous>, transform_indices = @transform_13, window_bounds = array<i64: 3, 16, 32>}, {pipeline_mode = #tpu.pipeline_mode<synchronous>, transform_indices = @transform_14, window_bounds = array<i64: 3, 16, 32>}, {pipeline_mode = #tpu.pipeline_mode<synchronous>, transform_indices = @transform_15, window_bounds = array<i64: 3, 32, 32>}, {pipeline_mode = #tpu.pipeline_mode<synchronous>, transform_indices = @transform_16, window_bounds = array<i64: 3, 1, 32>}, {pipeline_mode = #tpu.pipeline_mode<synchronous>, transform_indices = @transform_17, window_bounds = array<i64: 3, 1, 32>}, {transform_indices = @transform_18, window_bounds = array<i64: 32, 128>}, {transform_indices = @transform_19, window_bounds = array<i64: 1, 128>}, {pipeline_mode = #tpu.pipeline_mode<synchronous>, transform_indices = @transform_20, window_bounds = array<i64: 2, 32>}, {pipeline_mode = #tpu.pipeline_mode<synchronous>, transform_indices = @transform_21, window_bounds = array<i64: 2, 256>}, {pipeline_mode = #tpu.pipeline_mode<synchronous>, transform_indices = @transform_22, window_bounds = array<i64: 2, 8>}]} {
    %c0_i32 = arith.constant 0 : i32
    %0 = arith.cmpi eq, %arg0, %c0_i32 : i32
    %1 = arith.extui %0 : i1 to i32
    %c0_i32_0 = arith.constant 0 : i32
    %2 = arith.cmpi ne, %1, %c0_i32_0 : i32
    scf.if %2 {
      %c0_18 = arith.constant 0 : index
      %32 = memref.load %arg1[%c0_18] : memref<2xi32, #tpu.memory_space<smem>>
      %c0_i32_19 = arith.constant 0 : i32
      %c0_i32_20 = arith.constant 0 : i32
      %33 = tpu.memref_slice %arg5[%32, %c0_i32_20] : memref<256x16xf32, #tpu.memory_space<any>> -> memref<1x16xf32, #tpu.memory_space<any>>
      %c0_i32_21 = arith.constant 0 : i32
      %c0_i32_22 = arith.constant 0 : i32
      %34 = tpu.memref_slice %arg25[%c0_i32_21, %c0_i32_22] : memref<2x16xf32, #tpu.memory_space<vmem>> -> memref<1x16xf32, #tpu.memory_space<vmem>>
      %35 = tpu.memref_slice %arg26[%c0_i32_19] : memref<2x!tpu.dma_semaphore, #tpu.memory_space<semaphore_mem>> -> memref<1x!tpu.dma_semaphore, #tpu.memory_space<semaphore_mem>>
      %36 = tpu.memref_squeeze %35 : memref<1x!tpu.dma_semaphore, #tpu.memory_space<semaphore_mem>> -> memref<!tpu.dma_semaphore, #tpu.memory_space<semaphore_mem>>
      tpu.enqueue_dma source(%33 : memref<1x16xf32, #tpu.memory_space<any>>) target(%34 : memref<1x16xf32, #tpu.memory_space<vmem>>) target_semaphore(%36 : memref<!tpu.dma_semaphore, #tpu.memory_space<semaphore_mem>>)
      %c1 = arith.constant 1 : index
      %37 = memref.load %arg1[%c1] : memref<2xi32, #tpu.memory_space<smem>>
      %c1_i32_23 = arith.constant 1 : i32
      %c0_i32_24 = arith.constant 0 : i32
      %38 = tpu.memref_slice %arg5[%37, %c0_i32_24] : memref<256x16xf32, #tpu.memory_space<any>> -> memref<1x16xf32, #tpu.memory_space<any>>
      %c1_i32_25 = arith.constant 1 : i32
      %c0_i32_26 = arith.constant 0 : i32
      %39 = tpu.memref_slice %arg25[%c1_i32_25, %c0_i32_26] : memref<2x16xf32, #tpu.memory_space<vmem>> -> memref<1x16xf32, #tpu.memory_space<vmem>>
      %40 = tpu.memref_slice %arg26[%c1_i32_23] : memref<2x!tpu.dma_semaphore, #tpu.memory_space<semaphore_mem>> -> memref<1x!tpu.dma_semaphore, #tpu.memory_space<semaphore_mem>>
      %41 = tpu.memref_squeeze %40 : memref<1x!tpu.dma_semaphore, #tpu.memory_space<semaphore_mem>> -> memref<!tpu.dma_semaphore, #tpu.memory_space<semaphore_mem>>
      tpu.enqueue_dma source(%38 : memref<1x16xf32, #tpu.memory_space<any>>) target(%39 : memref<1x16xf32, #tpu.memory_space<vmem>>) target_semaphore(%41 : memref<!tpu.dma_semaphore, #tpu.memory_space<semaphore_mem>>)
      %c0_27 = arith.constant 0 : index
      %42 = memref.load %arg1[%c0_27] : memref<2xi32, #tpu.memory_space<smem>>
      %c0_i32_28 = arith.constant 0 : i32
      %c0_i32_29 = arith.constant 0 : i32
      %43 = tpu.memref_slice %arg5[%42, %c0_i32_29] : memref<256x16xf32, #tpu.memory_space<any>> -> memref<1x16xf32, #tpu.memory_space<any>>
      %c0_i32_30 = arith.constant 0 : i32
      %c0_i32_31 = arith.constant 0 : i32
      %44 = tpu.memref_slice %arg25[%c0_i32_30, %c0_i32_31] : memref<2x16xf32, #tpu.memory_space<vmem>> -> memref<1x16xf32, #tpu.memory_space<vmem>>
      %45 = tpu.memref_slice %arg26[%c0_i32_28] : memref<2x!tpu.dma_semaphore, #tpu.memory_space<semaphore_mem>> -> memref<1x!tpu.dma_semaphore, #tpu.memory_space<semaphore_mem>>
      %46 = tpu.memref_squeeze %45 : memref<1x!tpu.dma_semaphore, #tpu.memory_space<semaphore_mem>> -> memref<!tpu.dma_semaphore, #tpu.memory_space<semaphore_mem>>
      tpu.wait_dma2 semaphore(%46 : memref<!tpu.dma_semaphore, #tpu.memory_space<semaphore_mem>>) src(%43 : memref<1x16xf32, #tpu.memory_space<any>>) dst(%44 : memref<1x16xf32, #tpu.memory_space<vmem>>)
      %c1_32 = arith.constant 1 : index
      %47 = memref.load %arg1[%c1_32] : memref<2xi32, #tpu.memory_space<smem>>
      %c1_i32_33 = arith.constant 1 : i32
      %c0_i32_34 = arith.constant 0 : i32
      %48 = tpu.memref_slice %arg5[%47, %c0_i32_34] : memref<256x16xf32, #tpu.memory_space<any>> -> memref<1x16xf32, #tpu.memory_space<any>>
      %c1_i32_35 = arith.constant 1 : i32
      %c0_i32_36 = arith.constant 0 : i32
      %49 = tpu.memref_slice %arg25[%c1_i32_35, %c0_i32_36] : memref<2x16xf32, #tpu.memory_space<vmem>> -> memref<1x16xf32, #tpu.memory_space<vmem>>
      %50 = tpu.memref_slice %arg26[%c1_i32_33] : memref<2x!tpu.dma_semaphore, #tpu.memory_space<semaphore_mem>> -> memref<1x!tpu.dma_semaphore, #tpu.memory_space<semaphore_mem>>
      %51 = tpu.memref_squeeze %50 : memref<1x!tpu.dma_semaphore, #tpu.memory_space<semaphore_mem>> -> memref<!tpu.dma_semaphore, #tpu.memory_space<semaphore_mem>>
      tpu.wait_dma2 semaphore(%51 : memref<!tpu.dma_semaphore, #tpu.memory_space<semaphore_mem>>) src(%48 : memref<1x16xf32, #tpu.memory_space<any>>) dst(%49 : memref<1x16xf32, #tpu.memory_space<vmem>>)
      %c0_37 = arith.constant 0 : index
      %c0_38 = arith.constant 0 : index
      %52 = vector.load %arg2[%c0_37, %c0_38] : memref<2x32xf32, #tpu.memory_space<vmem>>, vector<2x32xf32>
      %c0_39 = arith.constant 0 : index
      %c0_40 = arith.constant 0 : index
      %53 = vector.load %arg25[%c0_39, %c0_40] : memref<2x16xf32, #tpu.memory_space<vmem>>, vector<2x16xf32>
      %c0_41 = arith.constant 0 : index
      %c0_42 = arith.constant 0 : index
      %c0_43 = arith.constant 0 : index
      %54 = vector.load %arg4[%c0_41, %c0_42, %c0_43] : memref<2x8x16xf32, #tpu.memory_space<vmem>>, vector<2x8x16xf32>
      %55 = vector.shape_cast %54 : vector<2x8x16xf32> to vector<16x16xf32>
      %c0_44 = arith.constant 0 : index
      %c0_45 = arith.constant 0 : index
      %56 = vector.load %arg6[%c0_44, %c0_45] : memref<16x32xf32, #tpu.memory_space<vmem>>, vector<16x32xf32>
      %cst_46 = arith.constant dense<0.000000e+00> : vector<16x32xf32>
      %57 = tpu.matmul %55, %56, %cst_46 {dimension_numbers = #tpu.dot_dimension_numbers<[1], [0], [0], [1], [0, 0, 1, 1], [], []>} : vector<16x16xf32>, vector<16x32xf32>, vector<16x32xf32> -> vector<16x32xf32>
      %58 = vector.shape_cast %57 : vector<16x32xf32> to vector<2x8x32xf32>
      %c0_47 = arith.constant 0 : index
      %c0_48 = arith.constant 0 : index
      %59 = vector.load %arg7[%c0_47, %c0_48] : memref<32x32xf32, #tpu.memory_space<vmem>>, vector<32x32xf32>
      %cst_49 = arith.constant dense<0.000000e+00> : vector<2x32xf32>
      %60 = tpu.matmul %52, %59, %cst_49 {dimension_numbers = #tpu.dot_dimension_numbers<[1], [0], [0], [1], [0, 0, 1, 1], [], []>} : vector<2x32xf32>, vector<32x32xf32>, vector<2x32xf32> -> vector<2x32xf32>
      %c0_50 = arith.constant 0 : index
      %c0_51 = arith.constant 0 : index
      %61 = vector.load %arg8[%c0_50, %c0_51] : memref<1x32xf32, #tpu.memory_space<vmem>>, vector<1x32xf32>
      %62 = vector.broadcast %61 : vector<1x32xf32> to vector<2x32xf32>
      %63 = arith.addf %60, %62 : vector<2x32xf32>
      %64 = vector.shape_cast %63 : vector<2x32xf32> to vector<2x1x32xf32>
      %65 = vector.broadcast %64 : vector<2x1x32xf32> to vector<2x8x32xf32>
      %66 = arith.addf %58, %65 : vector<2x8x32xf32>
      %67 = math.tanh %66 : vector<2x8x32xf32>
      %c0_52 = arith.constant 0 : index
      %c0_53 = arith.constant 0 : index
      %68 = vector.load %arg9[%c0_52, %c0_53] : memref<1x32xf32, #tpu.memory_space<vmem>>, vector<1x32xf32>
      %69 = vector.shape_cast %68 : vector<1x32xf32> to vector<1x1x32xf32>
      %70 = vector.broadcast %69 : vector<1x1x32xf32> to vector<2x8x32xf32>
      %71 = arith.mulf %67, %70 : vector<2x8x32xf32>
      %cst_54 = arith.constant dense<0.000000e+00> : vector<2x8xf32>
      %72 = vector.multi_reduction <add>, %71, %cst_54 [2] : vector<2x8x32xf32> to vector<2x8xf32>
      %cst_55 = arith.constant dense<0xFF800000> : vector<2xf32>
      %73 = vector.multi_reduction <maximumf>, %72, %cst_55 [1] : vector<2x8xf32> to vector<2xf32>
      %74 = vector.shape_cast %73 : vector<2xf32> to vector<2x1xf32>
      %75 = vector.broadcast %74 : vector<2x1xf32> to vector<2x8xf32>
      %76 = arith.subf %72, %75 : vector<2x8xf32>
      %77 = math.exp %76 : vector<2x8xf32>
      %cst_56 = arith.constant dense<0.000000e+00> : vector<2xf32>
      %78 = vector.multi_reduction <add>, %77, %cst_56 [1] : vector<2x8xf32> to vector<2xf32>
      %79 = vector.shape_cast %78 : vector<2xf32> to vector<2x1xf32>
      %80 = vector.broadcast %79 : vector<2x1xf32> to vector<2x8xf32>
      %81 = arith.divf %77, %80 : vector<2x8xf32>
      %82 = vector.shape_cast %81 : vector<2x8xf32> to vector<2x8x1xf32>
      %83 = vector.broadcast %82 : vector<2x8x1xf32> to vector<2x8x16xf32>
      %84 = arith.mulf %83, %54 : vector<2x8x16xf32>
      %cst_57 = arith.constant dense<0.000000e+00> : vector<2x16xf32>
      %85 = vector.multi_reduction <add>, %84, %cst_57 [1] : vector<2x8x16xf32> to vector<2x16xf32>
      %c0_58 = arith.constant 0 : index
      %c0_59 = arith.constant 0 : index
      %c0_60 = arith.constant 0 : index
      %86 = vector.load %arg3[%c0_58, %c0_59, %c0_60] : memref<2x8x16xf32, #tpu.memory_space<vmem>>, vector<2x8x16xf32>
      %87 = vector.shape_cast %86 : vector<2x8x16xf32> to vector<16x16xf32>
      %c0_61 = arith.constant 0 : index
      %c0_62 = arith.constant 0 : index
      %88 = vector.load %arg10[%c0_61, %c0_62] : memref<16x32xf32, #tpu.memory_space<vmem>>, vector<16x32xf32>
      %cst_63 = arith.constant dense<0.000000e+00> : vector<16x32xf32>
      %89 = tpu.matmul %87, %88, %cst_63 {dimension_numbers = #tpu.dot_dimension_numbers<[1], [0], [0], [1], [0, 0, 1, 1], [], []>} : vector<16x16xf32>, vector<16x32xf32>, vector<16x32xf32> -> vector<16x32xf32>
      %90 = vector.shape_cast %89 : vector<16x32xf32> to vector<2x8x32xf32>
      %c0_64 = arith.constant 0 : index
      %c0_65 = arith.constant 0 : index
      %91 = vector.load %arg11[%c0_64, %c0_65] : memref<32x32xf32, #tpu.memory_space<vmem>>, vector<32x32xf32>
      %cst_66 = arith.constant dense<0.000000e+00> : vector<2x32xf32>
      %92 = tpu.matmul %52, %91, %cst_66 {dimension_numbers = #tpu.dot_dimension_numbers<[1], [0], [0], [1], [0, 0, 1, 1], [], []>} : vector<2x32xf32>, vector<32x32xf32>, vector<2x32xf32> -> vector<2x32xf32>
      %c0_67 = arith.constant 0 : index
      %c0_68 = arith.constant 0 : index
      %93 = vector.load %arg12[%c0_67, %c0_68] : memref<1x32xf32, #tpu.memory_space<vmem>>, vector<1x32xf32>
      %94 = vector.broadcast %93 : vector<1x32xf32> to vector<2x32xf32>
      %95 = arith.addf %92, %94 : vector<2x32xf32>
      %96 = vector.shape_cast %95 : vector<2x32xf32> to vector<2x1x32xf32>
      %97 = vector.broadcast %96 : vector<2x1x32xf32> to vector<2x8x32xf32>
      %98 = arith.addf %90, %97 : vector<2x8x32xf32>
      %99 = math.tanh %98 : vector<2x8x32xf32>
      %c0_69 = arith.constant 0 : index
      %c0_70 = arith.constant 0 : index
      %100 = vector.load %arg13[%c0_69, %c0_70] : memref<1x32xf32, #tpu.memory_space<vmem>>, vector<1x32xf32>
      %101 = vector.shape_cast %100 : vector<1x32xf32> to vector<1x1x32xf32>
      %102 = vector.broadcast %101 : vector<1x1x32xf32> to vector<2x8x32xf32>
      %103 = arith.mulf %99, %102 : vector<2x8x32xf32>
      %cst_71 = arith.constant dense<0.000000e+00> : vector<2x8xf32>
      %104 = vector.multi_reduction <add>, %103, %cst_71 [2] : vector<2x8x32xf32> to vector<2x8xf32>
      %cst_72 = arith.constant dense<0xFF800000> : vector<2xf32>
      %105 = vector.multi_reduction <maximumf>, %104, %cst_72 [1] : vector<2x8xf32> to vector<2xf32>
      %106 = vector.shape_cast %105 : vector<2xf32> to vector<2x1xf32>
      %107 = vector.broadcast %106 : vector<2x1xf32> to vector<2x8xf32>
      %108 = arith.subf %104, %107 : vector<2x8xf32>
      %109 = math.exp %108 : vector<2x8xf32>
      %cst_73 = arith.constant dense<0.000000e+00> : vector<2xf32>
      %110 = vector.multi_reduction <add>, %109, %cst_73 [1] : vector<2x8xf32> to vector<2xf32>
      %111 = vector.shape_cast %110 : vector<2xf32> to vector<2x1xf32>
      %112 = vector.broadcast %111 : vector<2x1xf32> to vector<2x8xf32>
      %113 = arith.divf %109, %112 : vector<2x8xf32>
      %114 = vector.shape_cast %113 : vector<2x8xf32> to vector<2x8x1xf32>
      %115 = vector.broadcast %114 : vector<2x8x1xf32> to vector<2x8x16xf32>
      %116 = arith.mulf %115, %86 : vector<2x8x16xf32>
      %cst_74 = arith.constant dense<0.000000e+00> : vector<2x16xf32>
      %117 = vector.multi_reduction <add>, %116, %cst_74 [1] : vector<2x8x16xf32> to vector<2x16xf32>
      %c0_75 = arith.constant 0 : index
      %c0_76 = arith.constant 0 : index
      %c0_77 = arith.constant 0 : index
      %118 = vector.load %arg14[%c0_75, %c0_76, %c0_77] : memref<3x16x32xf32, #tpu.memory_space<vmem>>, vector<1x16x32xf32>
      %119 = vector.shape_cast %118 : vector<1x16x32xf32> to vector<16x32xf32>
      %cst_78 = arith.constant dense<0.000000e+00> : vector<2x32xf32>
      %120 = tpu.matmul %53, %119, %cst_78 {dimension_numbers = #tpu.dot_dimension_numbers<[1], [0], [0], [1], [0, 0, 1, 1], [], []>} : vector<2x16xf32>, vector<16x32xf32>, vector<2x32xf32> -> vector<2x32xf32>
      %c0_79 = arith.constant 0 : index
      %c0_80 = arith.constant 0 : index
      %c0_81 = arith.constant 0 : index
      %121 = vector.load %arg15[%c0_79, %c0_80, %c0_81] : memref<3x16x32xf32, #tpu.memory_space<vmem>>, vector<1x16x32xf32>
      %122 = vector.shape_cast %121 : vector<1x16x32xf32> to vector<16x32xf32>
      %cst_82 = arith.constant dense<0.000000e+00> : vector<2x32xf32>
      %123 = tpu.matmul %85, %122, %cst_82 {dimension_numbers = #tpu.dot_dimension_numbers<[1], [0], [0], [1], [0, 0, 1, 1], [], []>} : vector<2x16xf32>, vector<16x32xf32>, vector<2x32xf32> -> vector<2x32xf32>
      %124 = arith.addf %120, %123 : vector<2x32xf32>
      %c0_83 = arith.constant 0 : index
      %c0_84 = arith.constant 0 : index
      %c0_85 = arith.constant 0 : index
      %125 = vector.load %arg16[%c0_83, %c0_84, %c0_85] : memref<3x16x32xf32, #tpu.memory_space<vmem>>, vector<1x16x32xf32>
      %126 = vector.shape_cast %125 : vector<1x16x32xf32> to vector<16x32xf32>
      %cst_86 = arith.constant dense<0.000000e+00> : vector<2x32xf32>
      %127 = tpu.matmul %117, %126, %cst_86 {dimension_numbers = #tpu.dot_dimension_numbers<[1], [0], [0], [1], [0, 0, 1, 1], [], []>} : vector<2x16xf32>, vector<16x32xf32>, vector<2x32xf32> -> vector<2x32xf32>
      %128 = arith.addf %124, %127 : vector<2x32xf32>
      %c0_87 = arith.constant 0 : index
      %c0_88 = arith.constant 0 : index
      %c0_89 = arith.constant 0 : index
      %129 = vector.load %arg18[%c0_87, %c0_88, %c0_89] : memref<3x1x32xf32, #tpu.memory_space<vmem>>, vector<1x1x32xf32>
      %130 = vector.shape_cast %129 : vector<1x1x32xf32> to vector<1x32xf32>
      %131 = vector.broadcast %130 : vector<1x32xf32> to vector<2x32xf32>
      %132 = arith.addf %128, %131 : vector<2x32xf32>
      %c0_90 = arith.constant 0 : index
      %c0_91 = arith.constant 0 : index
      %c0_92 = arith.constant 0 : index
      %133 = vector.load %arg17[%c0_90, %c0_91, %c0_92] : memref<3x32x32xf32, #tpu.memory_space<vmem>>, vector<1x32x32xf32>
      %134 = vector.shape_cast %133 : vector<1x32x32xf32> to vector<32x32xf32>
      %cst_93 = arith.constant dense<0.000000e+00> : vector<2x32xf32>
      %135 = tpu.matmul %52, %134, %cst_93 {dimension_numbers = #tpu.dot_dimension_numbers<[1], [0], [0], [1], [0, 0, 1, 1], [], []>} : vector<2x32xf32>, vector<32x32xf32>, vector<2x32xf32> -> vector<2x32xf32>
      %c0_94 = arith.constant 0 : index
      %c0_95 = arith.constant 0 : index
      %c0_96 = arith.constant 0 : index
      %136 = vector.load %arg19[%c0_94, %c0_95, %c0_96] : memref<3x1x32xf32, #tpu.memory_space<vmem>>, vector<1x1x32xf32>
      %137 = vector.shape_cast %136 : vector<1x1x32xf32> to vector<1x32xf32>
      %138 = vector.broadcast %137 : vector<1x32xf32> to vector<2x32xf32>
      %139 = arith.addf %135, %138 : vector<2x32xf32>
      %c1_97 = arith.constant 1 : index
      %c0_98 = arith.constant 0 : index
      %c0_99 = arith.constant 0 : index
      %140 = vector.load %arg14[%c1_97, %c0_98, %c0_99] : memref<3x16x32xf32, #tpu.memory_space<vmem>>, vector<1x16x32xf32>
      %141 = vector.shape_cast %140 : vector<1x16x32xf32> to vector<16x32xf32>
      %cst_100 = arith.constant dense<0.000000e+00> : vector<2x32xf32>
      %142 = tpu.matmul %53, %141, %cst_100 {dimension_numbers = #tpu.dot_dimension_numbers<[1], [0], [0], [1], [0, 0, 1, 1], [], []>} : vector<2x16xf32>, vector<16x32xf32>, vector<2x32xf32> -> vector<2x32xf32>
      %c1_101 = arith.constant 1 : index
      %c0_102 = arith.constant 0 : index
      %c0_103 = arith.constant 0 : index
      %143 = vector.load %arg15[%c1_101, %c0_102, %c0_103] : memref<3x16x32xf32, #tpu.memory_space<vmem>>, vector<1x16x32xf32>
      %144 = vector.shape_cast %143 : vector<1x16x32xf32> to vector<16x32xf32>
      %cst_104 = arith.constant dense<0.000000e+00> : vector<2x32xf32>
      %145 = tpu.matmul %85, %144, %cst_104 {dimension_numbers = #tpu.dot_dimension_numbers<[1], [0], [0], [1], [0, 0, 1, 1], [], []>} : vector<2x16xf32>, vector<16x32xf32>, vector<2x32xf32> -> vector<2x32xf32>
      %146 = arith.addf %142, %145 : vector<2x32xf32>
      %c1_105 = arith.constant 1 : index
      %c0_106 = arith.constant 0 : index
      %c0_107 = arith.constant 0 : index
      %147 = vector.load %arg16[%c1_105, %c0_106, %c0_107] : memref<3x16x32xf32, #tpu.memory_space<vmem>>, vector<1x16x32xf32>
      %148 = vector.shape_cast %147 : vector<1x16x32xf32> to vector<16x32xf32>
      %cst_108 = arith.constant dense<0.000000e+00> : vector<2x32xf32>
      %149 = tpu.matmul %117, %148, %cst_108 {dimension_numbers = #tpu.dot_dimension_numbers<[1], [0], [0], [1], [0, 0, 1, 1], [], []>} : vector<2x16xf32>, vector<16x32xf32>, vector<2x32xf32> -> vector<2x32xf32>
      %150 = arith.addf %146, %149 : vector<2x32xf32>
      %c1_109 = arith.constant 1 : index
      %c0_110 = arith.constant 0 : index
      %c0_111 = arith.constant 0 : index
      %151 = vector.load %arg18[%c1_109, %c0_110, %c0_111] : memref<3x1x32xf32, #tpu.memory_space<vmem>>, vector<1x1x32xf32>
      %152 = vector.shape_cast %151 : vector<1x1x32xf32> to vector<1x32xf32>
      %153 = vector.broadcast %152 : vector<1x32xf32> to vector<2x32xf32>
      %154 = arith.addf %150, %153 : vector<2x32xf32>
      %c1_112 = arith.constant 1 : index
      %c0_113 = arith.constant 0 : index
      %c0_114 = arith.constant 0 : index
      %155 = vector.load %arg17[%c1_112, %c0_113, %c0_114] : memref<3x32x32xf32, #tpu.memory_space<vmem>>, vector<1x32x32xf32>
      %156 = vector.shape_cast %155 : vector<1x32x32xf32> to vector<32x32xf32>
      %cst_115 = arith.constant dense<0.000000e+00> : vector<2x32xf32>
      %157 = tpu.matmul %52, %156, %cst_115 {dimension_numbers = #tpu.dot_dimension_numbers<[1], [0], [0], [1], [0, 0, 1, 1], [], []>} : vector<2x32xf32>, vector<32x32xf32>, vector<2x32xf32> -> vector<2x32xf32>
      %c1_116 = arith.constant 1 : index
      %c0_117 = arith.constant 0 : index
      %c0_118 = arith.constant 0 : index
      %158 = vector.load %arg19[%c1_116, %c0_117, %c0_118] : memref<3x1x32xf32, #tpu.memory_space<vmem>>, vector<1x1x32xf32>
      %159 = vector.shape_cast %158 : vector<1x1x32xf32> to vector<1x32xf32>
      %160 = vector.broadcast %159 : vector<1x32xf32> to vector<2x32xf32>
      %161 = arith.addf %157, %160 : vector<2x32xf32>
      %c2 = arith.constant 2 : index
      %c0_119 = arith.constant 0 : index
      %c0_120 = arith.constant 0 : index
      %162 = vector.load %arg14[%c2, %c0_119, %c0_120] : memref<3x16x32xf32, #tpu.memory_space<vmem>>, vector<1x16x32xf32>
      %163 = vector.shape_cast %162 : vector<1x16x32xf32> to vector<16x32xf32>
      %cst_121 = arith.constant dense<0.000000e+00> : vector<2x32xf32>
      %164 = tpu.matmul %53, %163, %cst_121 {dimension_numbers = #tpu.dot_dimension_numbers<[1], [0], [0], [1], [0, 0, 1, 1], [], []>} : vector<2x16xf32>, vector<16x32xf32>, vector<2x32xf32> -> vector<2x32xf32>
      %c2_122 = arith.constant 2 : index
      %c0_123 = arith.constant 0 : index
      %c0_124 = arith.constant 0 : index
      %165 = vector.load %arg15[%c2_122, %c0_123, %c0_124] : memref<3x16x32xf32, #tpu.memory_space<vmem>>, vector<1x16x32xf32>
      %166 = vector.shape_cast %165 : vector<1x16x32xf32> to vector<16x32xf32>
      %cst_125 = arith.constant dense<0.000000e+00> : vector<2x32xf32>
      %167 = tpu.matmul %85, %166, %cst_125 {dimension_numbers = #tpu.dot_dimension_numbers<[1], [0], [0], [1], [0, 0, 1, 1], [], []>} : vector<2x16xf32>, vector<16x32xf32>, vector<2x32xf32> -> vector<2x32xf32>
      %168 = arith.addf %164, %167 : vector<2x32xf32>
      %c2_126 = arith.constant 2 : index
      %c0_127 = arith.constant 0 : index
      %c0_128 = arith.constant 0 : index
      %169 = vector.load %arg16[%c2_126, %c0_127, %c0_128] : memref<3x16x32xf32, #tpu.memory_space<vmem>>, vector<1x16x32xf32>
      %170 = vector.shape_cast %169 : vector<1x16x32xf32> to vector<16x32xf32>
      %cst_129 = arith.constant dense<0.000000e+00> : vector<2x32xf32>
      %171 = tpu.matmul %117, %170, %cst_129 {dimension_numbers = #tpu.dot_dimension_numbers<[1], [0], [0], [1], [0, 0, 1, 1], [], []>} : vector<2x16xf32>, vector<16x32xf32>, vector<2x32xf32> -> vector<2x32xf32>
      %172 = arith.addf %168, %171 : vector<2x32xf32>
      %c2_130 = arith.constant 2 : index
      %c0_131 = arith.constant 0 : index
      %c0_132 = arith.constant 0 : index
      %173 = vector.load %arg18[%c2_130, %c0_131, %c0_132] : memref<3x1x32xf32, #tpu.memory_space<vmem>>, vector<1x1x32xf32>
      %174 = vector.shape_cast %173 : vector<1x1x32xf32> to vector<1x32xf32>
      %175 = vector.broadcast %174 : vector<1x32xf32> to vector<2x32xf32>
      %176 = arith.addf %172, %175 : vector<2x32xf32>
      %c2_133 = arith.constant 2 : index
      %c0_134 = arith.constant 0 : index
      %c0_135 = arith.constant 0 : index
      %177 = vector.load %arg17[%c2_133, %c0_134, %c0_135] : memref<3x32x32xf32, #tpu.memory_space<vmem>>, vector<1x32x32xf32>
      %178 = vector.shape_cast %177 : vector<1x32x32xf32> to vector<32x32xf32>
      %cst_136 = arith.constant dense<0.000000e+00> : vector<2x32xf32>
      %179 = tpu.matmul %52, %178, %cst_136 {dimension_numbers = #tpu.dot_dimension_numbers<[1], [0], [0], [1], [0, 0, 1, 1], [], []>} : vector<2x32xf32>, vector<32x32xf32>, vector<2x32xf32> -> vector<2x32xf32>
      %c2_137 = arith.constant 2 : index
      %c0_138 = arith.constant 0 : index
      %c0_139 = arith.constant 0 : index
      %180 = vector.load %arg19[%c2_137, %c0_138, %c0_139] : memref<3x1x32xf32, #tpu.memory_space<vmem>>, vector<1x1x32xf32>
      %181 = vector.shape_cast %180 : vector<1x1x32xf32> to vector<1x32xf32>
      %182 = vector.broadcast %181 : vector<1x32xf32> to vector<2x32xf32>
      %183 = arith.addf %179, %182 : vector<2x32xf32>
      %184 = arith.addf %132, %139 : vector<2x32xf32>
      %185 = arith.negf %184 : vector<2x32xf32>
      %186 = math.exp %185 : vector<2x32xf32>
      %cst_140 = arith.constant 1.000000e+00 : f32
      %187 = vector.broadcast %cst_140 : f32 to vector<2x32xf32>
      %188 = arith.addf %187, %186 : vector<2x32xf32>
      %189 = arith.divf %187, %188 : vector<2x32xf32>
      %190 = arith.addf %154, %161 : vector<2x32xf32>
      %191 = arith.negf %190 : vector<2x32xf32>
      %192 = math.exp %191 : vector<2x32xf32>
      %cst_141 = arith.constant 1.000000e+00 : f32
      %193 = vector.broadcast %cst_141 : f32 to vector<2x32xf32>
      %194 = arith.addf %193, %192 : vector<2x32xf32>
      %195 = arith.divf %193, %194 : vector<2x32xf32>
      %196 = arith.mulf %189, %183 : vector<2x32xf32>
      %197 = arith.addf %176, %196 : vector<2x32xf32>
      %198 = math.tanh %197 : vector<2x32xf32>
      %cst_142 = arith.constant 1.000000e+00 : f32
      %199 = vector.broadcast %cst_142 : f32 to vector<2x32xf32>
      %200 = arith.subf %199, %195 : vector<2x32xf32>
      %201 = arith.mulf %200, %198 : vector<2x32xf32>
      %202 = arith.mulf %195, %52 : vector<2x32xf32>
      %203 = arith.addf %201, %202 : vector<2x32xf32>
      %c0_143 = arith.constant 0 : index
      %c0_144 = arith.constant 0 : index
      %204 = vector.load %arg27[%c0_143, %c0_144] : memref<2x32xf32, #tpu.memory_space<vmem>>, vector<2x32xf32>
      tpu.vector_store %arg27[%c0_143, %c0_144], %203 {strides = array<i32>} : memref<2x32xf32, #tpu.memory_space<vmem>>, vector<2x32xf32>,
      %c0_145 = arith.constant 0 : index
      %c0_146 = arith.constant 0 : index
      %205 = vector.load %arg22[%c0_145, %c0_146] : memref<2x32xf32, #tpu.memory_space<vmem>>, vector<2x32xf32>
      tpu.vector_store %arg22[%c0_145, %c0_146], %203 {strides = array<i32>} : memref<2x32xf32, #tpu.memory_space<vmem>>, vector<2x32xf32>,
      %c0_147 = arith.constant 0 : index
      %c0_148 = arith.constant 0 : index
      %206 = vector.load %arg24[%c0_147, %c0_148] : memref<2x8xf32, #tpu.memory_space<vmem>>, vector<2x8xf32>
      tpu.vector_store %arg24[%c0_147, %c0_148], %81 {strides = array<i32>} : memref<2x8xf32, #tpu.memory_space<vmem>>, vector<2x8xf32>,
      %cst_149 = arith.constant 0xFF800000 : f32
      %207 = vector.broadcast %cst_149 : f32 to vector<2x1xf32>
      %c0_150 = arith.constant 0 : index
      %c0_151 = arith.constant 0 : index
      %208 = vector.load %arg28[%c0_150, %c0_151] : memref<2x1xf32, #tpu.memory_space<vmem>>, vector<2x1xf32>
      tpu.vector_store %arg28[%c0_150, %c0_151], %207 {strides = array<i32>} : memref<2x1xf32, #tpu.memory_space<vmem>>, vector<2x1xf32>,
      %cst_152 = arith.constant 0.000000e+00 : f32
      %209 = vector.broadcast %cst_152 : f32 to vector<2x1xf32>
      %c0_153 = arith.constant 0 : index
      %c0_154 = arith.constant 0 : index
      %210 = vector.load %arg29[%c0_153, %c0_154] : memref<2x1xf32, #tpu.memory_space<vmem>>, vector<2x1xf32>
      tpu.vector_store %arg29[%c0_153, %c0_154], %209 {strides = array<i32>} : memref<2x1xf32, #tpu.memory_space<vmem>>, vector<2x1xf32>,
    } else {
    }
    %c0 = arith.constant 0 : index
    %c0_1 = arith.constant 0 : index
    %3 = vector.load %arg27[%c0, %c0_1] : memref<2x32xf32, #tpu.memory_space<vmem>>, vector<2x32xf32>
    %c0_2 = arith.constant 0 : index
    %c0_3 = arith.constant 0 : index
    %4 = vector.load %arg20[%c0_2, %c0_3] : memref<32x128xf32, #tpu.memory_space<vmem>>, vector<32x128xf32>
    %cst = arith.constant dense<0.000000e+00> : vector<2x128xf32>
    %5 = tpu.matmul %3, %4, %cst {dimension_numbers = #tpu.dot_dimension_numbers<[1], [0], [0], [1], [0, 0, 1, 1], [], []>} : vector<2x32xf32>, vector<32x128xf32>, vector<2x128xf32> -> vector<2x128xf32>
    %c0_4 = arith.constant 0 : index
    %c0_5 = arith.constant 0 : index
    %6 = vector.load %arg21[%c0_4, %c0_5] : memref<1x128xf32, #tpu.memory_space<vmem>>, vector<1x128xf32>
    %7 = vector.broadcast %6 : vector<1x128xf32> to vector<2x128xf32>
    %8 = arith.addf %5, %7 : vector<2x128xf32>
    %c128_i32 = arith.constant 128 : i32
    %9 = arith.muli %arg0, %c128_i32 : i32
    %10 = tpu.assume_multiple %9, 128 : i32
    %c0_6 = arith.constant 0 : index
    %11 = arith.index_cast %10 : i32 to index
    %12 = vector.load %arg23[%c0_6, %11] : memref<2x256xf32, #tpu.memory_space<vmem>>, vector<2x128xf32>
    tpu.vector_store %arg23[%c0_6, %11], %8 {strides = array<i32>} : memref<2x256xf32, #tpu.memory_space<vmem>>, vector<2x128xf32>,
    %c0_7 = arith.constant 0 : index
    %c0_8 = arith.constant 0 : index
    %13 = vector.load %arg28[%c0_7, %c0_8] : memref<2x1xf32, #tpu.memory_space<vmem>>, vector<2x1xf32>
    %cst_9 = arith.constant dense<0xFF800000> : vector<2xf32>
    %14 = vector.multi_reduction <maximumf>, %8, %cst_9 [1] : vector<2x128xf32> to vector<2xf32>
    %15 = vector.shape_cast %14 : vector<2xf32> to vector<2x1xf32>
    %16 = arith.maximumf %13, %15 : vector<2x1xf32>
    %c0_10 = arith.constant 0 : index
    %c0_11 = arith.constant 0 : index
    %17 = vector.load %arg29[%c0_10, %c0_11] : memref<2x1xf32, #tpu.memory_space<vmem>>, vector<2x1xf32>
    %18 = arith.subf %13, %16 : vector<2x1xf32>
    %19 = math.exp %18 : vector<2x1xf32>
    %20 = arith.mulf %17, %19 : vector<2x1xf32>
    %21 = vector.broadcast %16 : vector<2x1xf32> to vector<2x128xf32>
    %22 = arith.subf %8, %21 : vector<2x128xf32>
    %23 = math.exp %22 : vector<2x128xf32>
    %cst_12 = arith.constant dense<0.000000e+00> : vector<2xf32>
    %24 = vector.multi_reduction <add>, %23, %cst_12 [1] : vector<2x128xf32> to vector<2xf32>
    %25 = vector.shape_cast %24 : vector<2xf32> to vector<2x1xf32>
    %26 = arith.addf %20, %25 : vector<2x1xf32>
    %c0_13 = arith.constant 0 : index
    %c0_14 = arith.constant 0 : index
    %27 = vector.load %arg29[%c0_13, %c0_14] : memref<2x1xf32, #tpu.memory_space<vmem>>, vector<2x1xf32>
    tpu.vector_store %arg29[%c0_13, %c0_14], %26 {strides = array<i32>} : memref<2x1xf32, #tpu.memory_space<vmem>>, vector<2x1xf32>,
    %c0_15 = arith.constant 0 : index
    %c0_16 = arith.constant 0 : index
    %28 = vector.load %arg28[%c0_15, %c0_16] : memref<2x1xf32, #tpu.memory_space<vmem>>, vector<2x1xf32>
    tpu.vector_store %arg28[%c0_15, %c0_16], %16 {strides = array<i32>} : memref<2x1xf32, #tpu.memory_space<vmem>>, vector<2x1xf32>,
    %c1_i32 = arith.constant 1 : i32
    %29 = arith.cmpi eq, %arg0, %c1_i32 : i32
    %30 = arith.extui %29 : i1 to i32
    %c0_i32_17 = arith.constant 0 : i32
    %31 = arith.cmpi ne, %30, %c0_i32_17 : i32
    scf.if %31 {
      %c0_18 = arith.constant 0 : index
      %c0_19 = arith.constant 0 : index
      %32 = vector.load %arg28[%c0_18, %c0_19] : memref<2x1xf32, #tpu.memory_space<vmem>>, vector<2x1xf32>
      %c0_20 = arith.constant 0 : index
      %c0_21 = arith.constant 0 : index
      %33 = vector.load %arg29[%c0_20, %c0_21] : memref<2x1xf32, #tpu.memory_space<vmem>>, vector<2x1xf32>
      %34 = math.log %33 : vector<2x1xf32>
      %35 = arith.addf %32, %34 : vector<2x1xf32>
      %c0_22 = arith.constant 0 : index
      %c0_23 = arith.constant 0 : index
      %36 = vector.load %arg23[%c0_22, %c0_23] : memref<2x256xf32, #tpu.memory_space<vmem>>, vector<2x256xf32>
      %37 = vector.broadcast %35 : vector<2x1xf32> to vector<2x256xf32>
      %38 = arith.subf %36, %37 : vector<2x256xf32>
      %c0_24 = arith.constant 0 : index
      %c0_25 = arith.constant 0 : index
      %39 = vector.load %arg23[%c0_24, %c0_25] : memref<2x256xf32, #tpu.memory_space<vmem>>, vector<2x256xf32>
      tpu.vector_store %arg23[%c0_24, %c0_25], %38 {strides = array<i32>} : memref<2x256xf32, #tpu.memory_space<vmem>>, vector<2x256xf32>,
    } else {
    }
    return
  }
  func.func @transform_0(%arg0: i32, %arg1: memref<2xi32, #tpu.memory_space<smem>>) -> (i32, i32) {
    %c0_i32 = arith.constant 0 : i32
    %c0_i32_0 = arith.constant 0 : i32
    %c0_i32_1 = arith.constant 0 : i32
    return %c0_i32, %c0_i32_0 : i32, i32
  }
  func.func @transform_1(%arg0: i32, %arg1: memref<2xi32, #tpu.memory_space<smem>>) -> (i32, i32, i32) {
    %c0_i32 = arith.constant 0 : i32
    %c0_i32_0 = arith.constant 0 : i32
    %c0_i32_1 = arith.constant 0 : i32
    %c0_i32_2 = arith.constant 0 : i32
    return %c0_i32, %c0_i32_0, %c0_i32_1 : i32, i32, i32
  }
  func.func @transform_2(%arg0: i32, %arg1: memref<2xi32, #tpu.memory_space<smem>>) -> (i32, i32, i32) {
    %c0_i32 = arith.constant 0 : i32
    %c0_i32_0 = arith.constant 0 : i32
    %c0_i32_1 = arith.constant 0 : i32
    %c0_i32_2 = arith.constant 0 : i32
    return %c0_i32, %c0_i32_0, %c0_i32_1 : i32, i32, i32
  }
  func.func @transform_4(%arg0: i32, %arg1: memref<2xi32, #tpu.memory_space<smem>>) -> (i32, i32) {
    %c0_i32 = arith.constant 0 : i32
    %c0_i32_0 = arith.constant 0 : i32
    %c0_i32_1 = arith.constant 0 : i32
    return %c0_i32, %c0_i32_0 : i32, i32
  }
  func.func @transform_5(%arg0: i32, %arg1: memref<2xi32, #tpu.memory_space<smem>>) -> (i32, i32) {
    %c0_i32 = arith.constant 0 : i32
    %c0_i32_0 = arith.constant 0 : i32
    %c0_i32_1 = arith.constant 0 : i32
    return %c0_i32, %c0_i32_0 : i32, i32
  }
  func.func @transform_6(%arg0: i32, %arg1: memref<2xi32, #tpu.memory_space<smem>>) -> (i32, i32) {
    %c0_i32 = arith.constant 0 : i32
    %c0_i32_0 = arith.constant 0 : i32
    %c0_i32_1 = arith.constant 0 : i32
    return %c0_i32, %c0_i32_0 : i32, i32
  }
  func.func @transform_7(%arg0: i32, %arg1: memref<2xi32, #tpu.memory_space<smem>>) -> (i32, i32) {
    %c0_i32 = arith.constant 0 : i32
    %c0_i32_0 = arith.constant 0 : i32
    %c0_i32_1 = arith.constant 0 : i32
    return %c0_i32, %c0_i32_0 : i32, i32
  }
  func.func @transform_8(%arg0: i32, %arg1: memref<2xi32, #tpu.memory_space<smem>>) -> (i32, i32) {
    %c0_i32 = arith.constant 0 : i32
    %c0_i32_0 = arith.constant 0 : i32
    %c0_i32_1 = arith.constant 0 : i32
    return %c0_i32, %c0_i32_0 : i32, i32
  }
  func.func @transform_9(%arg0: i32, %arg1: memref<2xi32, #tpu.memory_space<smem>>) -> (i32, i32) {
    %c0_i32 = arith.constant 0 : i32
    %c0_i32_0 = arith.constant 0 : i32
    %c0_i32_1 = arith.constant 0 : i32
    return %c0_i32, %c0_i32_0 : i32, i32
  }
  func.func @transform_10(%arg0: i32, %arg1: memref<2xi32, #tpu.memory_space<smem>>) -> (i32, i32) {
    %c0_i32 = arith.constant 0 : i32
    %c0_i32_0 = arith.constant 0 : i32
    %c0_i32_1 = arith.constant 0 : i32
    return %c0_i32, %c0_i32_0 : i32, i32
  }
  func.func @transform_11(%arg0: i32, %arg1: memref<2xi32, #tpu.memory_space<smem>>) -> (i32, i32) {
    %c0_i32 = arith.constant 0 : i32
    %c0_i32_0 = arith.constant 0 : i32
    %c0_i32_1 = arith.constant 0 : i32
    return %c0_i32, %c0_i32_0 : i32, i32
  }
  func.func @transform_12(%arg0: i32, %arg1: memref<2xi32, #tpu.memory_space<smem>>) -> (i32, i32, i32) {
    %c0_i32 = arith.constant 0 : i32
    %c0_i32_0 = arith.constant 0 : i32
    %c0_i32_1 = arith.constant 0 : i32
    %c0_i32_2 = arith.constant 0 : i32
    return %c0_i32, %c0_i32_0, %c0_i32_1 : i32, i32, i32
  }
  func.func @transform_13(%arg0: i32, %arg1: memref<2xi32, #tpu.memory_space<smem>>) -> (i32, i32, i32) {
    %c0_i32 = arith.constant 0 : i32
    %c0_i32_0 = arith.constant 0 : i32
    %c0_i32_1 = arith.constant 0 : i32
    %c0_i32_2 = arith.constant 0 : i32
    return %c0_i32, %c0_i32_0, %c0_i32_1 : i32, i32, i32
  }
  func.func @transform_14(%arg0: i32, %arg1: memref<2xi32, #tpu.memory_space<smem>>) -> (i32, i32, i32) {
    %c0_i32 = arith.constant 0 : i32
    %c0_i32_0 = arith.constant 0 : i32
    %c0_i32_1 = arith.constant 0 : i32
    %c0_i32_2 = arith.constant 0 : i32
    return %c0_i32, %c0_i32_0, %c0_i32_1 : i32, i32, i32
  }
  func.func @transform_15(%arg0: i32, %arg1: memref<2xi32, #tpu.memory_space<smem>>) -> (i32, i32, i32) {
    %c0_i32 = arith.constant 0 : i32
    %c0_i32_0 = arith.constant 0 : i32
    %c0_i32_1 = arith.constant 0 : i32
    %c0_i32_2 = arith.constant 0 : i32
    return %c0_i32, %c0_i32_0, %c0_i32_1 : i32, i32, i32
  }
  func.func @transform_16(%arg0: i32, %arg1: memref<2xi32, #tpu.memory_space<smem>>) -> (i32, i32, i32) {
    %c0_i32 = arith.constant 0 : i32
    %c0_i32_0 = arith.constant 0 : i32
    %c0_i32_1 = arith.constant 0 : i32
    %c0_i32_2 = arith.constant 0 : i32
    return %c0_i32, %c0_i32_0, %c0_i32_1 : i32, i32, i32
  }
  func.func @transform_17(%arg0: i32, %arg1: memref<2xi32, #tpu.memory_space<smem>>) -> (i32, i32, i32) {
    %c0_i32 = arith.constant 0 : i32
    %c0_i32_0 = arith.constant 0 : i32
    %c0_i32_1 = arith.constant 0 : i32
    %c0_i32_2 = arith.constant 0 : i32
    return %c0_i32, %c0_i32_0, %c0_i32_1 : i32, i32, i32
  }
  func.func @transform_18(%arg0: i32, %arg1: memref<2xi32, #tpu.memory_space<smem>>) -> (i32, i32) {
    %c0_i32 = arith.constant 0 : i32
    %c0_i32_0 = arith.constant 0 : i32
    return %c0_i32, %arg0 : i32, i32
  }
  func.func @transform_19(%arg0: i32, %arg1: memref<2xi32, #tpu.memory_space<smem>>) -> (i32, i32) {
    %c0_i32 = arith.constant 0 : i32
    %c0_i32_0 = arith.constant 0 : i32
    return %c0_i32, %arg0 : i32, i32
  }
  func.func @transform_20(%arg0: i32, %arg1: memref<2xi32, #tpu.memory_space<smem>>) -> (i32, i32) {
    %c0_i32 = arith.constant 0 : i32
    %c0_i32_0 = arith.constant 0 : i32
    %c0_i32_1 = arith.constant 0 : i32
    return %c0_i32, %c0_i32_0 : i32, i32
  }
  func.func @transform_21(%arg0: i32, %arg1: memref<2xi32, #tpu.memory_space<smem>>) -> (i32, i32) {
    %c0_i32 = arith.constant 0 : i32
    %c0_i32_0 = arith.constant 0 : i32
    %c0_i32_1 = arith.constant 0 : i32
    return %c0_i32, %c0_i32_0 : i32, i32
  }
  func.func @transform_22(%arg0: i32, %arg1: memref<2xi32, #tpu.memory_space<smem>>) -> (i32, i32) {
    %c0_i32 = arith.constant 0 : i32
    %c0_i32_0 = arith.constant 0 : i32
    %c0_i32_1 = arith.constant 0 : i32
    return %c0_i32, %c0_i32_0 : i32, i32
  }
}

</mosaic_0001>

<bundles_post_ra>
// kernel: attention_decoder_forward.1
= control target key start
LH: loop header
LB: loop body
LE: loop exit
PB: predicated region body
PF: predicated region fallthrough
CT: control target
= control target key end

     0   :  { %s2922_s25 = smov [#allocation8]   ;;  %s3503_s0 = inlined_call_operand.vmem [shape: s32[2], index: 0, kind: input, shape index: {}]   ;;  %s3504_s1 = inlined_call_operand.hbm [shape: f32[2,32], index: 1, kind: input, shape index: {}]   ;;  %s3505_s2 = inlined_call_operand.vmem [shape: f32[2,8,16], index: 2, kind: input, shape index: {}]   ;;  %s3506_s3 = inlined_call_operand.hbm [shape: f32[2,8,16], index: 3, kind: input, shape index: {}]   ;;  %s3507_s4 = inlined_call_operand.vmem [shape: f32[256,16], index: 4, kind: input, shape index: {}]   ;;  %s3508_s5 = inlined_call_operand.hbm [shape: f32[16,32], index: 5, kind: input, shape index: {}]   ;;  %s3509_s6 = inlined_call_operand.vmem [shape: f32[32,32], index: 6, kind: input, shape index: {}]   ;;  %s3510_s7 = inlined_call_operand.hbm [shape: f32[1,32], index: 7, kind: input, shape index: {}]   ;;  %s3511_s8 = inlined_call_operand.hbm [shape: f32[1,32], index: 8, kind: input, shape index: {}]   ;;  %s3512_s9 = inlined_call_operand.hbm [shape: f32[16,32], index: 9, kind: input, shape index: {}]   ;;  %s3513_s10 = inlined_call_operand.hbm [shape: f32[32,32], index: 10, kind: input, shape index: {}]   ;;  %s3514_s11 = inlined_call_operand.hbm [shape: f32[1,32], index: 11, kind: input, shape index: {}]   ;;  %s3515_s12 = inlined_call_operand.hbm [shape: f32[1,32], index: 12, kind: input, shape index: {}]   ;;  %s3516_s13 = inlined_call_operand.vmem [shape: f32[3,16,32], index: 13, kind: input, shape index: {}]   ;;  %s3517_s14 = inlined_call_operand.vmem [shape: f32[3,16,32], index: 14, kind: input, shape index: {}]   ;;  %s3518_s15 = inlined_call_operand.hbm [shape: f32[3,16,32], index: 15, kind: input, shape index: {}]   ;;  %s3519_s16 = inlined_call_operand.vmem [shape: f32[3,32,32], index: 16, kind: input, shape index: {}]   ;;  %s3520_s17 = inlined_call_operand.vmem [shape: f32[3,1,32], index: 17, kind: input, shape index: {}]   ;;  %s3521_s18 = inlined_call_operand.hbm [shape: f32[3,1,32], index: 18, kind: input, shape index: {}]   ;;  %s3522_s19 = inlined_call_operand.vmem [shape: f32[32,256], index: 19, kind: input, shape index: {}]   ;;  %s3523_s20 = inlined_call_operand.hbm [shape: f32[1,256], index: 20, kind: input, shape index: {}]   ;;  %s3524_s21 = inlined_call_operand.hbm [shape: f32[2,32], index: 21, kind: output, shape index: {0}]   ;;  %s3525_s22 = inlined_call_operand.hbm [shape: f32[2,256], index: 22, kind: output, shape index: {1}]   ;;  %s3526_s23 = inlined_call_operand.hbm [shape: f32[2,8], index: 23, kind: output, shape index: {2}]  }
   0x1   :  { %3539 = sst [smem:[#allocation51_spill]] %s3503_s0 }
   0x2   :  { %3540 = sst [smem:[#allocation52_spill]] %s3504_s1 }
   0x3   :  { %3541 = sst [smem:[#allocation53_spill]] %s3505_s2 }
   0x4   :  { %3542 = sst [smem:[#allocation54_spill]] %s3506_s3 }
   0x5   :  { %3543 = sst [smem:[#allocation55_spill]] %s3507_s4 }
   0x6   :  { %3544 = sst [smem:[#allocation56_spill]] %s3508_s5 }
   0x7   :  { %3545 = sst [smem:[#allocation57_spill]] %s3509_s6 }
   0x8   :  { %3546 = sst [smem:[#allocation58_spill]] %s3510_s7 }
   0x9   :  { %3547 = sst [smem:[#allocation59_spill]] %s3512_s9 }
   0xa   :  { %3548 = sst [smem:[#allocation60_spill]] %s3516_s13 }
   0xb   :  { %3549 = sst [smem:[#allocation61_spill]] %s3517_s14 }
   0xc   :  { %3550 = sst [smem:[#allocation62_spill]] %s3519_s16 }
   0xd   :  { %3551 = sst [smem:[#allocation63_spill]] %s3520_s17 }
   0xe   :  { %3552 = sst [smem:[#allocation64_spill]] %s3524_s21 }
   0xf   :  { %3553 = sst [smem:[#allocation65_spill]] %s3525_s22 }
  0x10   :  { %3554 = sst [smem:[#allocation66_spill]] %s3526_s23 }
  0x11   :  { %s3555_s24 = sld [smem:[#allocation51_spill]] }
  0x17   :  { %s30_s17 = sshll.u32 %s3555_s24, 4  ;;  %s31_s17 = int_to_ptr.vmem [resolvable:$true] %s30_s17 }
  0x18   :  { %33 = dma.vmem_to_smem %s31_s17, 16, %s2922_s25, [#allocation7] }
  0x19   :  { %2864 = dma.done.wait [#allocation7], 16 }
  0x1a   :  { %2865 = vsyncadd [#allocation7], 4294967280 }
  0x1b   :  { %36 = sfence }
  0x1c   :  { %37 = vsyncpa [#allocation10], 0 }
  0x1d   :  { %38 = vsyncpa [#allocation13], 0 }
  0x1e   :  { %39 = vsyncpa [#allocation16], 0 }
  0x1f   :  { %40 = vsyncpa [#allocation19], 0 }
  0x20   :  { %41 = vsyncpa [#allocation22], 0 }
  0x21   :  { %42 = vsyncpa [#allocation25], 0 }
  0x22   :  { %43 = vsyncpa [#allocation29], 0 }
  0x23   :  { %45 = vsyncpa [#allocation29 + $0x1], 0 }
  0x24   :  { %46 = vsyncpa [#allocation11], 0 }
  0x25   :  { %47 = vsyncpa [#allocation32], 0  ;;  %s3070_s5 = smov 0   ;;  %s3072_s1 = smov 0  }
  0x26   :  { %s3074_s26 = smov 0   ;;  %s3076_s17 = smov 0  }
  0x27 LB: > { %s3089_s2 = sadd.s32 4294967295, %s2920_s17   ;;  %s3092_s6 = sadd.s32 1, %s2920_s17   ;;  %s2920_s17 = sphi %s3076_s17, %s3579_s17   ;;  %s2916_s26 = sphi %s3074_s26, %s3583_s26   ;;  %s2912_s1 = sphi %s3072_s1, %s3582_s1   ;;  %s2908_s5 = sphi %s3070_s5, %s3581_s5  }
  0x28   : > { %3556 = sst [smem:[#allocation48_spill]] %s3092_s6  ;;  %s414_s27 = ssub.s32 %s2920_s17, %s3092_s6 }
  0x29   : > { %s417_s7 = sadd.s32 1, %s2916_s26  ;;  %p415_p0 = scmp.eq.s32.totalorder %s414_s27, 0 }
  0x2a   : > { %p424_p1 = scmp.ne.s32.totalorder %s2916_s26, %s2912_s1  ;;  %p425_p2 = scmp.eq.s32.totalorder %s2920_s17, 0 }
  0x2b   : > { %p456_p3 = scmp.ne.s32.totalorder %s2912_s1, %s2908_s5  ;;  %p457_p5 = scmp.eq.s32.totalorder %s3089_s2, 0 }
  0x2c   : > { %s3102_s28 = scalar_select %p415_p0, %s2916_s26, %s417_s7  }
  0x2d   : > { %p3104_p4 = por %p425_p2, %p424_p1  ;;  %p2079_p6 = scmp.ge.s32.totalorder %s2920_s17, 1 }
  0x2e   : > { %3557 = sst [smem:[#allocation49_spill]] %s3102_s28  ;;  %p530_p7 = scmp.lt.s32.totalorder %s2920_s17, 3 }
  0x2f   : > { %p3113_p8 = por %p457_p5, %p456_p3  ;;  %p2080_p9 = scmp.ne.s32.totalorder %s3089_s2, 0 }
  0x30   : > { %p3118_p10 = pnand %p2079_p6, %p530_p7  ;;  %s3562_s24 = sld [smem:[#allocation54_spill]] }
  0x31   : > { %s3559_s3 = scalar_select %p3113_p8, 1, 0 }
  0x32   : > { %p2219_p11 = pneg %p3118_p10  ;;  %s2923_s5 = smov [#allocation12]  }
  0x33   : > { %3560 = sst [smem:[#allocation50_spill]] %s3559_s3  ;;  %s558_s27 = sshll.u32 %s2923_s5, 4  ;;  %s559_s27 = int_to_ptr.vmem [resolvable:$true] %s558_s27 }
  0x34   : > { %p3129_p12 = pnand %p2219_p11, %p457_p5  ;;  %s3564_s23 = sld [smem:[#allocation58_spill]] }
  0x35   : > { %s2924_s4 = smov 128   ;;  %s2925_s30 = smov 8  }
  0x36   : > { %s556_s25 = sshll.u32 %s3562_s24, 4  ;;  %s2926_s24 = smov [#allocation15]   ;;  %s557_s25 = int_to_ptr.hbm [resolvable:$true] %s556_s25 }
  0x37   : > { %2225 = dma.hbm_to_vmem [thread:$0]  (!%p3129_p12), %s557_s25, 256, %s559_s27, [#allocation13], %s2924_s4, %s2924_s4, %s2925_s30  }
  0x38   : > { %s590_s5 = sshll.u32 %s2926_s24, 4  ;;  %s3565_s9 = sld [smem:[#allocation59_spill]]  ;;  %s591_s5 = int_to_ptr.vmem [resolvable:$true] %s590_s5 }
  0x39   : > { %s640_s28 = sshll.u32 %s3514_s11, 4  ;;  %s2927_s13 = smov [#allocation18]   ;;  %s641_s28 = int_to_ptr.hbm [resolvable:$true] %s640_s28 }
  0x3a   : > { %s588_s21 = sshll.u32 %s3564_s23, 4  ;;  %s613_s3 = sshll.u32 %s2927_s13, 4  ;;  %s589_s21 = int_to_ptr.hbm [resolvable:$true] %s588_s21  ;;  %s614_s3 = int_to_ptr.vmem [resolvable:$true] %s613_s3 }
  0x3b   : > { %2231 = dma.hbm_to_vmem [thread:$0]  (!%p3129_p12), %s589_s21, 16, %s591_s5, [#allocation16]  }
  0x3c   : > { %s2928_s16 = smov [#allocation21]   ;;  %s669_s21 = sshll.u32 %s3518_s15, 4  ;;  %s670_s21 = int_to_ptr.hbm [resolvable:$true] %s669_s21 }
  0x3d   : > { %s642_s22 = sshll.u32 %s2928_s16, 4  ;;  %s3566_s5 = sld [smem:[#allocation52_spill]]  ;;  %s643_s22 = int_to_ptr.vmem [resolvable:$true] %s642_s22 }
  0x3e   : > { %s611_s14 = sshll.u32 %s3565_s9, 4  ;;  %s2929_s6 = smov [#allocation24]   ;;  %s612_s14 = int_to_ptr.hbm [resolvable:$true] %s611_s14 }
  0x3f   : > { %2237 = dma.hbm_to_vmem [thread:$0]  (!%p3129_p12), %s612_s14, 256, %s614_s3, [#allocation19], %s2924_s4, %s2924_s4, %s2925_s30  }
  0x40   : > { %2243 = dma.hbm_to_vmem [thread:$0]  (!%p3129_p12), %s641_s28, 16, %s643_s22, [#allocation22]  }
  0x41   : > { %s671_s9 = sshll.u32 %s2929_s6, 4  ;;  %s2930_s14 = smov [#allocation9]   ;;  %s672_s9 = int_to_ptr.vmem [resolvable:$true] %s671_s9 }
  0x42   : > { %2249 = dma.hbm_to_vmem [thread:$0]  (!%p3129_p12), %s670_s21, 768, %s672_s9, [#allocation25], %s2924_s4, %s2924_s4, %s2925_s30  }
  0x43   : > { %s542_s23 = sshll.u32 %s3566_s5, 4  ;;  %s544_s3 = sshll.u32 %s2930_s14, 4  ;;  %s543_s23 = int_to_ptr.hbm [resolvable:$true] %s542_s23  ;;  %s545_s3 = int_to_ptr.vmem [resolvable:$true] %s544_s3 }
  0x44   : > { %s3567_s27 = sld [smem:[#allocation56_spill]]  ;;  %s600_s13 = sshll.u32 %s3511_s8, 4  ;;  %s601_s13 = int_to_ptr.hbm [resolvable:$true] %s600_s13 }
  0x45   : > { %2222 = dma.hbm_to_vmem [thread:$0]  (!%p3129_p12), %s543_s23, 32, %s545_s3, [#allocation10]  }
  0x46   : > { %s2931_s5 = smov [#allocation14]   ;;  %s2932_s9 = smov [#allocation17]  }
  0x47   : > { %s572_s6 = sshll.u32 %s2931_s5, 4  ;;  %s602_s21 = sshll.u32 %s2932_s9, 4  ;;  %s573_s6 = int_to_ptr.vmem [resolvable:$true] %s572_s6  ;;  %s603_s21 = int_to_ptr.vmem [resolvable:$true] %s602_s21 }
  0x48   : > { %s625_s23 = sshll.u32 %s3513_s10, 4  ;;  %s2933_s22 = smov [#allocation20]   ;;  %s626_s23 = int_to_ptr.hbm [resolvable:$true] %s625_s23 }
  0x49   : > { %2234 = dma.hbm_to_vmem [thread:$0]  (!%p3129_p12), %s601_s13, 16, %s603_s21, [#allocation16]  }
  0x4a   : > { %s570_s28 = sshll.u32 %s3567_s27, 4  ;;  %s652_s27 = sshll.u32 %s3515_s12, 4  ;;  %s571_s28 = int_to_ptr.hbm [resolvable:$true] %s570_s28  ;;  %s653_s27 = int_to_ptr.hbm [resolvable:$true] %s652_s27 }
  0x4b   : > { %2228 = dma.hbm_to_vmem [thread:$0]  (!%p3129_p12), %s571_s28, 256, %s573_s6, [#allocation13], %s2924_s4, %s2924_s4, %s2925_s30  }
  0x4c   : > { %s627_s24 = sshll.u32 %s2933_s22, 4  ;;  %s2934_s28 = smov [#allocation23]   ;;  %s628_s24 = int_to_ptr.vmem [resolvable:$true] %s627_s24 }
  0x4d   : > { %2240 = dma.hbm_to_vmem [thread:$0]  (!%p3129_p12), %s626_s23, 512, %s628_s24, [#allocation19], %s2924_s4, %s2924_s4, %s2925_s30  }
  0x4e   : > { %s654_s5 = sshll.u32 %s2934_s28, 4  ;;  %s689_s13 = sshll.u32 %s3521_s18, 4  ;;  %s655_s5 = int_to_ptr.vmem [resolvable:$true] %s654_s5  ;;  %s690_s13 = int_to_ptr.hbm [resolvable:$true] %s689_s13 }
  0x4f   : > { %2246 = dma.hbm_to_vmem [thread:$0]  (!%p3129_p12), %s653_s27, 16, %s655_s5, [#allocation22]  }
  0x50   : > { %s2935_s21 = smov [#allocation26]   ;;  %s2936_s16 = smov 16  }
  0x51   : > { %s691_s14 = sshll.u32 %s2935_s21, 4  ;;  %s2937_s3 = smov 1   ;;  %s692_s14 = int_to_ptr.vmem [resolvable:$true] %s691_s14 }
  0x52   : > { %2252 = dma.hbm_to_vmem [thread:$0]  (!%p3129_p12), %s690_s13, 48, %s692_s14, [#allocation25], %s2936_s16, %s2936_s16, %s2937_s3  }
  0x53   : > { %p2091_p13 = scmp.ge.s32.totalorder %s2920_s17, 2 }
  0x55   : > { %701 = sbr.rel (%p2091_p13) target bundleno = 113 (0x71), region = 84 }
  0x5a   : > { %704 = sbr.rel (!%p3104_p4) target bundleno = 98 (0x62), region = 88  ;;  %s706_s4 = sand.u32 (%p3104_p4), 1, %s2916_s26  }
  0x5b   : > { %s2093_s30 = sshll.u32 (%p3104_p4), %s2920_s17, 3  ;;  %s2092_s23 = sshll.u32 (%p3104_p4), %s706_s4, 5 }
  0x5c   : > { %s710_s22 = scalar_lea.vmem (%p3104_p4), %s3522_s19, %s2093_s30  ;;  %s708_s7 = scalar_lea.vmem (%p3104_p4), [#allocation27], %s2092_s23 }
  0x5d   : > { %v745_v0 = vld [vmem:[%s710_s22] sm:$0xff] (%p3104_p4)  ;;  %v747_v1 = vld [vmem:[%s710_s22 + $0x10] sm:$0xff] (%p3104_p4) }
  0x5e   : > { %v749_v2 = vld [vmem:[%s710_s22 + $0x20] sm:$0xff] (%p3104_p4)  ;;  %746 = vst [vmem:[%s708_s7] sm:$0xff] (%p3104_p4), %v745_v0  ;;  %v751_v3 = vld [vmem:[%s710_s22 + $0x30] sm:$0xff] (%p3104_p4) }
  0x5f   : > { %748 = vst [vmem:[%s708_s7 + $0x8] sm:$0xff] %v747_v1 }
  0x60   : > { %750 = vst [vmem:[%s708_s7 + $0x10] sm:$0xff] %v749_v2 }
  0x61   : > { %752 = vst [vmem:[%s708_s7 + $0x18] sm:$0xff] %v751_v3 }
  0x62 PF: > { %s759_s24 = sand.u32 1, %s2916_s26   ;;  %s765_s6 = scalar_lea.hbm %s3523_s20, %s2920_s17 }
  0x63   : > { %s767_s9 = sshll.u32 %s765_s6, 4  ;;  %s762_s13 = scalar_lea.vmem [#allocation28], %s759_s24  ;;  %s768_s9 = int_to_ptr.hbm [resolvable:$true] %s767_s9 }
  0x64   : > { %s769_s21 = sshll.u32 %s762_s13, 4  ;;  %s760_s14 = scalar_lea.sflag [#allocation29], %s759_s24  ;;  %s770_s21 = int_to_ptr.vmem [resolvable:$true] %s769_s21 }
  0x65   : > { %s2736_s16 = sshra.s32 %s768_s9, 4  ;;  %s2742_s23 = scalar_lea.hbm %s3523_s20, 2  ;;  %s2737_s16 = int_to_ptr.hbm [resolvable:$true] %s2736_s16 }
  0x66   : > { %s2738_s3 = scalar_lea.hbm %s2737_s16, 1  ;;  %p2743_p3 = scmp.lt.s32.totalorder %s2737_s16, %s3523_s20 }
  0x67   : > { %p2739_p0 = scmp.ne.s32.totalorder %s2737_s16, %s2738_s3  ;;  %p2744_p6 = scmp.lt.s32.totalorder %s2742_s23, %s2738_s3 }
  0x69   : > { %p2740_p1 = pnand %p2739_p0, %p3104_p4  ;;  %p2745_p7 = por %p2744_p6, %p2743_p3 }
  0x6b   : > { %p2741_p2 = pneg %p2740_p1 }
  0x6d   : > { %p2746_p11 = pnand %p2745_p7, %p2741_p2 }
  0x6f   : > { %2749 = shalt.err (!%p2746_p11)
}
  0x70   : > { %2183 = dma.hbm_to_vmem [thread:$0]  (%p3104_p4), %s768_s9, 16, %s770_s21, %s760_s14  }
  0x71 PF: > { %778 = sbr.rel (%p3118_p10) target bundleno = 1816 (0x718), region = 130 }
  0x76   : > { %2867 = dma.done.wait (%p457_p5), [#allocation10], 32  }
  0x77   : > { %2869 = vsyncadd (%p457_p5), [#allocation10], 4294967264 }
  0x78   : > { %2871 = dma.done.wait (%p457_p5), [#allocation13], 512  }
  0x79   : > { %2873 = vsyncadd (%p457_p5), [#allocation13], 4294966784 }
  0x7a   : > { %2875 = dma.done.wait (%p457_p5), [#allocation16], 32  }
  0x7b   : > { %2877 = vsyncadd (%p457_p5), [#allocation16], 4294967264 }
  0x7c   : > { %2879 = dma.done.wait (%p457_p5), [#allocation19], 768  }
  0x7d   : > { %2881 = vsyncadd (%p457_p5), [#allocation19], 4294966528 }
  0x7e   : > { %2883 = dma.done.wait (%p457_p5), [#allocation22], 32  }
  0x7f   : > { %2885 = vsyncadd (%p457_p5), [#allocation22], 4294967264 }
  0x80   : > { %2887 = dma.done.wait (%p457_p5), [#allocation25], 816  }
  0x81   : > { %2889 = vsyncadd (%p457_p5), [#allocation25], 4294966480  ;;  %s3250_s29 = sand.u32 1, %s2912_s1  }
  0x82   : > { %s2106_s0 = sshll.u32 %s3250_s29, 5  ;;  %s843_s7 = scalar_lea.sflag [#allocation29], %s3250_s29 }
  0x83   : > { %s3253_s22 = scalar_lea.vmem [#allocation27], %s2106_s0  ;;  %s845_s24 = scalar_lea.vmem [#allocation28], %s3250_s29 }
  0x84   : > { %2891 = dma.done.wait (%p3113_p8), %s843_s7, 16  }
  0x85   : > { %2893 = vsyncadd (%p3113_p8), %s843_s7, 4294967280  ;;  %906 = sbr.rel (%p2080_p9) target bundleno = 1158 (0x486), region = 186  ;;  %s907_s28 = sld [smem:[#allocation8]] (!%p2080_p9) }
  0x86   : > { %s3569_s9 = sld [smem:[#allocation55_spill]] (!%p2080_p9) }
  0x8c   : > { %s908_s13 = scalar_lea.vmem %s3569_s9, %s907_s28 }
  0x8d   : > { %v923_v4 = vld [vmem:[%s908_s13] sm:$0x1] }
  0x8e   : > { %924 = vst [vmem:[#allocation2] sm:$0x1] %v923_v4 }
  0x8f   : > { %942 = vsyncadd [#allocation3], 16  ;;  %s2108_s21 = sld [smem:[#allocation8 + $0x1]] }
  0x95   : > { %s944_s3 = scalar_lea.vmem %s3569_s9, %s2108_s21 }
  0x96   : > { %v961_v5 = vld [vmem:[%s944_s3] sm:$0x1] }
  0x97   : > { %962 = vst [vmem:[#allocation2 + $0x1] sm:$0x1] %v961_v5 }
  0x98   : > { %980 = vsyncadd [#allocation3 + $0x1], 16 }
  0x99   : > { %2894 = dma.done.wait [#allocation3], 16 }
  0x9a   : > { %2895 = vsyncadd [#allocation3], 4294967280 }
  0x9b   : > { %2896 = dma.done.wait [#allocation3 + $0x1], 16 }
  0x9c   : > { %2897 = vsyncadd [#allocation3 + $0x1], 4294967280  ;;  %vm1737_vm0 = vcmask 1024   ;;  %v2938_v6 = vmov -inf   ;;  %v2939_v7 = vmov 0.0   ;;  %s3570_s23 = sld [smem:[#allocation57_spill]]  ;;  %v1080_v60 = vlaneseq }
  0x9d   : > { %1738 = vst.msk [vmem:[#allocation5] sm:$0x3] %vm1737_vm0, %v2938_v6  ;;  %v993_v9 = vld [vmem:[#allocation14 + $0x8] sm:$0xff]  ;;  %v1214_v11 = vld [vmem:[#allocation20 + $0x18] sm:$0xff]  ;;  %vm994_vm1 = vcmask 130048   ;;  %v1213_v14 = vld [vmem:[#allocation20 + $0x10] sm:$0xff] }
  0x9e   : > { %1739 = vst.msk [vmem:[#allocation6] sm:$0x3] %vm1737_vm0, %v2939_v7  ;;  %1015 = vmatpush.msra.mxu0 %v993_v9  ;;  %v992_v12 = vld [vmem:[#allocation14] sm:$0xff]  ;;  %1231 = vmatpush.msra.mxu3 %v1214_v11  ;;  %v3278_v15 = vld [vmem:[#allocation12] sm:$0xff]  ;;  %v3285_v18 = vld [vmem:[#allocation9] sm:$0x3] }
  0x9f   : > { %v1212_v17 = vld [vmem:[#allocation20 + $0x8] sm:$0xff]  ;;  %v1181_v19 = vld [vmem:[#allocation18 + $0x8] sm:$0xff]  ;;  %v1180_v20 = vld [vmem:[#allocation18] sm:$0xff]  ;;  %vm1032_vm2 = vcmask 261120   ;;  %s3571_s13 = sld [smem:[#allocation53_spill]]  ;;  %v3313_v61 = vand.u32 127, %v1080_v60 }
  0xa0   : > { %1016 = vmatpush.msra.mxu0 %v992_v12  ;;  %1232 = vmatpush.msra.mxu3 %v1213_v14  ;;  %v1211_v21 = vld [vmem:[#allocation20] sm:$0xff]  ;;  %v3296_v23 = vld [vmem:[#allocation12 + $0x8] sm:$0xff]  ;;  %v2341_v26 = vld [vmem:[#allocation15] ss:$0 sm:$0xff]  ;;  %vm1084_vm3 = vcmask 1041409   ;;  %vm1087_vm4 = vcmask 58368  }
  0xa1   : > { %2109 = vmatmul.msk.f32.vlgmr.msra.gmra.mxu0 %vm994_vm1, %v3278_v15  ;;  %1202 = vmatpush.msra.mxu2 %v1181_v19  ;;  %v2342_v32 = vld [vmem:[#allocation21] ss:$0 sm:$0xff]  ;;  %v2343_v41 = vld [vmem:[#allocation17] ss:$0 sm:$0xff]  ;;  %v2344_v50 = vld [vmem:[#allocation23] ss:$0 sm:$0xff] }
  0xa2   : > { %v1027_v8 = vld [vmem:[%s3570_s23 + $0x18] sm:$0xff]  ;;  %v1026_v10 = vld [vmem:[%s3570_s23 + $0x10] sm:$0xff]  ;;  %v1025_v13 = vld [vmem:[%s3570_s23 + $0x8] sm:$0xff]  ;;  %1233 = vmatpush.msra.mxu3 %v1212_v17  ;;  %v2940_v9 = vmov 0   ;;  %s3572_s4 = sld [smem:[#allocation60_spill]] }
  0xa3   : > { %1048 = vmatpush.msra.mxu1 %v1027_v8  ;;  %v1024_v16 = vld [vmem:[%s3570_s23] sm:$0xff]  ;;  %1203 = vmatpush.msra.mxu2 %v1180_v20  ;;  %s3573_s0 = sld [smem:[#allocation61_spill]] }
  0xa4   : > { %1234 = vmatpush.msra.mxu3 %v1211_v21  ;;  %2339 = vset.pattern.permute.xlu1 %v2940_v9  ;;  %s3574_s30 = sld [smem:[#allocation62_spill]] }
  0xa5   : > { %1049 = vmatpush.msra.mxu1 %v1026_v10  ;;  %v3290_v22 = vld [vmem:[%s3571_s13] sm:$0xff]  ;;  %2114 = vmatmul.msk.f32.vlgmr.msra.gmra.mxu3 %vm1032_vm2, %v3285_v18  ;;  %v3305_v24 = vld [vmem:[%s3571_s13 + $0x8] sm:$0xff]  ;;  %s3575_s7 = sld [smem:[#allocation63_spill]] }
  0xa6   : > { %2112 = vmatmul.msk.f32.vlgmr.msra.gmra.mxu2 %vm994_vm1, %v3290_v22  ;;  %2338 = vset.pattern.permute.xlu0 %v2940_v9 }
  0xa7   : > { %1050 = vmatpush.msra.mxu1 %v1025_v13  ;;  %2340 = vset.pattern.permute.xlu2 %v2940_v9 }
  0xa9   : > { %1051 = vmatpush.msra.mxu1 %v1024_v16  ;;  %2110 = vmatmul.msk.f32.gmra.mxu0 %vm994_vm1, %v3296_v23 }
  0xaa   : > { %2111 = vmatmul.msk.f32.vlgmr.msra.gmra.mxu1 %vm1032_vm2, %v3285_v18 }
  0xae   : > { %2113 = vmatmul.msk.f32.gmra.mxu2 %vm994_vm1, %v3305_v24 }
 0x11e   : > { %v1018_v25 = vpop.f32.mrf.mxu0 }
 0x126   : > { %v1021_v31 = vpop.f32.mrf.mxu0 }
 0x127   : > { %v1053_v27 = vpop.f32.mrf.mxu1 }
 0x128   : > { %v1054_v28 = vadd.f32 %v2341_v26, %v1053_v27  ;;  %v1236_v36 = vpop.f32.mrf.mxu3 }
 0x129   : > { %v1205_v37 = vpop.f32.mrf.mxu2  ;;  %v1237_v38 = vadd.f32 %v2342_v32, %v1236_v36 }
 0x12a   : > { %v1057_v29 = vrot.slane %v1054_v28, 1  ;;  %v1058_v30 = vperm.slane %v1054_v28, 0 }
 0x12b   : > { %v1240_v39 = vrot.slane %v1237_v38, 1  ;;  %v1241_v40 = vperm.slane %v1237_v38, 0 }
 0x12c   : > { %v1062_v33 = vadd.f32 %v1058_v30, %v1018_v25  ;;  %v1059_v34 = vperm.slane %v1057_v29, 0 }
 0x12d   : > { %v1245_v42 = vadd.f32 %v1241_v40, %v1205_v37  ;;  %v1242_v43 = vperm.slane %v1240_v39, 0 }
 0x12e   : > { %2351 = vtanh.f32 %v1062_v33  ;;  %v1063_v35 = vadd.f32 %v1059_v34, %v1021_v31 }
 0x130   : > { %2353 = vtanh.f32 %v1063_v35 }
 0x131   : > { %2355 = vtanh.f32 %v1245_v42  ;;  %v1208_v46 = vpop.f32.mrf.mxu2 }
 0x132   : > { %v1246_v48 = vadd.f32 %v1242_v43, %v1208_v46 }
 0x134   : > { %v2352_v44 = vpop.eup %2351  ;;  %2357 = vtanh.f32 %v1246_v48 }
 0x135   : > { %v1070_v45 = vmul.f32 %v2352_v44, %v2343_v41 }
 0x136   : > { %v2354_v49 = vpop.eup %2353 }
 0x137   : > { %v1072_v47 = vsel %vm1032_vm2, %v1070_v45, 0.0  ;;  %v2356_v51 = vpop.eup %2355  ;;  %v1071_v52 = vmul.f32 %v2354_v49, %v2343_v41 }
 0x138   : > { %1073 = vadd.xlane.f32.xlu0 %v1072_v47  ;;  %v1253_v53 = vmul.f32 %v2356_v51, %v2344_v50 }
 0x139   : > { %v1075_v56 = vsel %vm1032_vm2, %v1071_v52, 0.0 }
 0x13a   : > { %v1255_v54 = vsel %vm1032_vm2, %v1253_v53, 0.0  ;;  %v2358_v55 = vpop.eup %2357 }
 0x13b   : > { %1256 = vadd.xlane.f32.xlu1 %v1255_v54  ;;  %v1254_v57 = vmul.f32 %v2358_v55, %v2344_v50 }
 0x13d   : > { %v1258_v58 = vsel %vm1032_vm2, %v1254_v57, 0.0 }
 0x140   : > { %1076 = vadd.xlane.f32.xlu0 %v1075_v56 }
 0x143   : > { %1259 = vadd.xlane.f32.xlu1 %v1258_v58 }
 0x1ab   : > { %v1074_v59 = vpop.xlane.xlu0 %1073 }
 0x1ac   : > { %v1082_v0 = vperm.slane %v1074_v59, %v3313_v61 }
 0x1ae   : > { %v1257_v62 = vpop.xlane.xlu1 %1256 }
 0x1af   : > { %v1263_v4 = vperm.slane %v1257_v62, %v3313_v61 }
 0x1b3   : > { %v1077_v63 = vpop.xlane.xlu0 %1076 }
 0x1b4   : > { %v1083_v1 = vperm.slane %v1077_v63, %v3313_v61 }
 0x1b6   : > { %v1085_v2 = vsel %vm1084_vm3, %v1083_v1, %v1082_v0  ;;  %v1260_v5 = vpop.xlane.xlu1 %1259 }
 0x1b7   : > { %v1088_v3 = vsel %vm1087_vm4, %v1085_v2, -inf  ;;  %v1264_v6 = vperm.slane %v1260_v5, %v3313_v61 }
 0x1b8   : > { %1089 = vmax.xlane.f32.xlu2 %v1088_v3 }
 0x1b9   : > { %v1265_v7 = vsel %vm1084_vm3, %v1264_v6, %v1263_v4 }
 0x1ba   : > { %v1267_v8 = vsel %vm1087_vm4, %v1265_v7, -inf }
 0x1c0   : > { %1268 = vmax.xlane.f32.xlu2 %v1267_v8 }
 0x22b   : > { %v1090_v10 = vpop.xlane.xlu2 %1089 }
 0x22c   : > { %v1092_v11 = vperm.slane %v1090_v10, 0  ;;  %v1093_v12 = vperm.slane %v1090_v10, 1 }
 0x22e   : > { %v1096_v13 = vsub.f32 %v1074_v59, %v1092_v11  ;;  %v1097_v14 = vsub.f32 %v1077_v63, %v1093_v12 }
 0x230   : > { %v1098_v16 = vmul.f32 1.442695, %v1096_v13  ;;  %v1100_v17 = vmul.f32 1.442695, %v1097_v14 }
 0x232   : > { %2359 = vpow2.f32 %v1098_v16 }
 0x233   : > { %2361 = vpow2.f32 %v1100_v17  ;;  %v1269_v19 = vpop.xlane.xlu2 %1268 }
 0x234   : > { %v1271_v20 = vperm.slane %v1269_v19, 0  ;;  %v1272_v21 = vperm.slane %v1269_v19, 1 }
 0x236   : > { %v1275_v25 = vsub.f32 %v1257_v62, %v1271_v20  ;;  %v1276_v29 = vsub.f32 %v1260_v5, %v1272_v21 }
 0x238   : > { %v2360_v26 = vpop.eup %2359  ;;  %v1277_v27 = vmul.f32 1.442695, %v1275_v25  ;;  %v1279_v30 = vmul.f32 1.442695, %v1276_v29 }
 0x239   : > { %v3323_v28 = vpop.eup %2361  ;;  %1105 = vperm.xlu0 %2338, %v2360_v26  }
 0x23a   : > { %2363 = vpow2.f32 %v1277_v27  ;;  %1108 = vperm.xlu1 %2339, %v3323_v28  }
 0x23b   : > { %2365 = vpow2.f32 %v1279_v30 }
 0x240   : > { %v3326_v31 = vpop.eup %2363 }
 0x241   : > { %1284 = vperm.xlu2 %2340, %v3326_v31   ;;  %v3329_v32 = vpop.eup %2365 }
 0x249   : > { %1287 = vperm.xlu2 %2340, %v3329_v32  }
 0x29b   : > { %v1285_v33 = vpop.permute.xlu2 %1284 }
 0x29c   : > { %v1289_v35 = vperm.slane %v1285_v33, %v3313_v61 }
 0x2a3   : > { %v1288_v34 = vpop.permute.xlu2 %1287 }
 0x2a4   : > { %v1290_v36 = vperm.slane %v1288_v34, %v3313_v61 }
 0x2a6   : > { %v1291_v37 = vsel %vm1084_vm3, %v1290_v36, %v1289_v35 }
 0x2a7   : > { %v1293_v38 = vsel %vm1087_vm4, %v1291_v37, 0.0 }
 0x2a8   : > { %1294 = vadd.xlane.f32.xlu2 %v1293_v38 }
 0x2ab   : > { %v1106_v39 = vpop.permute.xlu0 %1105 }
 0x2ac   : > { %v1109_v40 = vpop.permute.xlu1 %1108  ;;  %v1110_v41 = vperm.slane %v1106_v39, %v3313_v61  ;;  %v1358_v39 = vld [vmem:[%s3572_s4 + $0x8] sm:$0xff] }
 0x2ad   : > { %v1111_v42 = vperm.slane %v1109_v40, %v3313_v61  ;;  %1403 = vmatpush.msrb.mxu3 %v1358_v39  ;;  %v989_v40 = vld [vmem:[#allocation2] sm:$0x3] }
 0x2af   : > { %v1112_v43 = vsel %vm1084_vm3, %v1111_v42, %v1110_v41  ;;  %v1360_v41 = vld [vmem:[%s3573_s0 + $0x8] sm:$0xff]  ;;  %v2120_v42 = vld [vmem:[%s3572_s4 + $0x18] sm:$0xff] }
 0x2b0   : > { %v1114_v44 = vsel %vm1087_vm4, %v1112_v43, 0.0  ;;  %1380 = vmatpush.msrb.mxu1 %v1360_v41  ;;  %v2119_v43 = vld [vmem:[%s3572_s4 + $0x10] sm:$0xff] }
 0x2b1   : > { %1115 = vadd.xlane.f32.xlu1 %v1114_v44  ;;  %v1445_v44 = vld [vmem:[%s3574_s30 + $0x18] sm:$0xff] }
 0x2b2   : > { %1462 = vmatpush.msrb.mxu2 %v1445_v44 }
 0x31b   : > { %v1295_v45 = vpop.xlane.xlu2 %1294 }
 0x31c   : > { %v1297_v46 = vperm.slane %v1295_v45, 0  ;;  %v1298_v52 = vperm.slane %v1295_v45, 1  ;;  %v2122_v45 = vld [vmem:[%s3573_s0 + $0x18] sm:$0xff] }
 0x31e   : > { %2367 = vrcp.f32 %v1297_v46  ;;  %v1312_v19 = vand.u32 2147483648, %v1297_v46  ;;  %vm1306_vm14 = vweird.f32 %v1297_v46  ;;  %v1310_v21 = vand.u32 2147483647, %v1297_v46 }
 0x31f   : > { %v1327_v33 = vand.u32 2147483648, %v1298_v52  ;;  %v1325_v35 = vand.u32 2147483647, %v1298_v52 }
 0x320   : > { %v1313_v27 = vor.u32 1.1754944e-38, %v1312_v19  ;;  %vm1311_vm0 = vcmp.eq.f32.partialorder %v1310_v21, 8.507059e+37 }
 0x324   : > { %v1116_v47 = vpop.xlane.xlu1 %1115  ;;  %v2368_v50 = vpop.eup %2367 }
 0x325   : > { %v1118_v48 = vperm.slane %v1116_v47, 0  ;;  %v1119_v49 = vperm.slane %v1116_v47, 1  ;;  %v1302_v57 = vmul.f32 %v2368_v50, %v1297_v46  ;;  %vm1307_vm13 = vweird.f32 %v2368_v50 }
 0x326   : > { %vm1308_vm15 = vmor %vm1306_vm14, %vm1307_vm13  ;;  %vm1729_vm13 = vcmask 254976  }
 0x327   : > { %2369 = vrcp.f32 %v1118_v48  ;;  %v1133_v59 = vand.u32 2147483648, %v1118_v48  ;;  %v1131_v62 = vand.u32 2147483647, %v1118_v48  ;;  %vm1127_vm6 = vweird.f32 %v1118_v48 }
 0x328   : > { %2371 = vrcp.f32 %v1119_v49  ;;  %v1303_v1 = vsub.f32 1.0, %v1302_v57  ;;  %v1148_v7 = vand.u32 2147483648, %v1119_v49  ;;  %vm1142_vm10 = vweird.f32 %v1119_v49  ;;  %v1409_v57 = vld [vmem:[#allocation24] sm:$0xff] }
 0x329   : > { %2373 = vrcp.f32 %v1298_v52  ;;  %v1134_v2 = vor.u32 1.1754944e-38, %v1133_v59  ;;  %vm1132_vm8 = vcmp.eq.f32.partialorder %v1131_v62, 8.507059e+37  ;;  %v1146_v9 = vand.u32 2147483647, %v1119_v49  ;;  %v2129_v59 = vld [vmem:[%s3574_s30 + $0x30] sm:$0xff] }
 0x32a   : > { %v1304_v12 = vmul.f32 %v2368_v50, %v1303_v1  ;;  %v1149_v13 = vor.u32 1.1754944e-38, %v1148_v7  ;;  %v1518_v1 = vld [vmem:[#allocation24 + $0x18] sm:$0xff] }
 0x32b   : > { %vm1147_vm12 = vcmp.eq.f32.partialorder %v1146_v9, 8.507059e+37 }
 0x32c   : > { %v1305_v17 = vadd.f32 %v2368_v50, %v1304_v12 }
 0x32d   : > { %v2370_v51 = vpop.eup %2369 }
 0x32e   : > { %v2372_v53 = vpop.eup %2371  ;;  %v1123_v54 = vmul.f32 %v2370_v51, %v1118_v48  ;;  %vm1128_vm5 = vweird.f32 %v2370_v51  ;;  %v1309_v25 = vsel %vm1308_vm15, %v2368_v50, %v1305_v17  ;;  %v1444_v48 = vld [vmem:[%s3574_s30 + $0x10] sm:$0xff]  ;;  %v2133_v50 = vld [vmem:[%s3572_s4 + $0x28] sm:$0xff] }
 0x32f   : > { %v1138_v55 = vmul.f32 %v2372_v53, %v1119_v49  ;;  %vm1129_vm7 = vmor %vm1127_vm6, %vm1128_vm5  ;;  %vm1143_vm9 = vweird.f32 %v2372_v53  ;;  %v2374_v5 = vpop.eup %2373  ;;  %v1314_v29 = vsel %vm1311_vm0, %v1313_v27, %v1309_v25  ;;  %vm1321_vm6 = vweird.f32 %v1298_v52  ;;  %v2121_v49 = vld [vmem:[%s3573_s0 + $0x10] sm:$0xff]  ;;  %1463 = vmatpush.msrb.mxu2 %v1444_v48  ;;  %v2135_v25 = vld [vmem:[%s3573_s0 + $0x28] sm:$0xff] }
 0x330   : > { %v1124_v56 = vsub.f32 1.0, %v1123_v54  ;;  %vm1144_vm11 = vmor %vm1142_vm10, %vm1143_vm9  ;;  %v1317_v10 = vmul.f32 %v2374_v5, %v1298_v52  ;;  %vm1322_vm5 = vweird.f32 %v2374_v5  ;;  %v1315_v34 = vmul.f32 %v3326_v31, %v1314_v29  ;;  %v1357_v31 = vld [vmem:[%s3572_s4] sm:$0xff] }
 0x331   : > { %v1139_v58 = vsub.f32 1.0, %v1138_v55  ;;  %1404 = vmatpush.msrb.mxu3 %v1357_v31  ;;  %v2132_v52 = vld [vmem:[%s3572_s4 + $0x20] sm:$0xff] }
 0x332   : > { %v1125_v60 = vmul.f32 %v2370_v51, %v1124_v56  ;;  %v1318_v16 = vsub.f32 1.0, %v1317_v10  ;;  %2116 = vmatmul.msk.f32.vlgmr.msrb.gmra.mxu3 %vm994_vm1, %v989_v40  ;;  %v1442_v54 = vld [vmem:[%s3574_s30] sm:$0xff]  ;;  %v1410_v56 = vld [vmem:[#allocation24 + $0x8] sm:$0xff] }
 0x333   : > { %v1140_v63 = vmul.f32 %v2372_v53, %v1139_v58  ;;  %1510 = vmatpush.msra.mxu3 %v2120_v42  ;;  %v2130_v58 = vld [vmem:[%s3574_s30 + $0x38] sm:$0xff]  ;;  %1430 = vmatpush.msrb.mxu0 %v1410_v56 }
 0x334   : > { %v1126_v0 = vadd.f32 %v2370_v51, %v1125_v60 }
 0x335   : > { %v1141_v4 = vadd.f32 %v2372_v53, %v1140_v63  ;;  %1511 = vmatpush.msra.mxu3 %v2119_v43  ;;  %1431 = vmatpush.msrb.mxu0 %v1409_v57  ;;  %v1624_v43 = vld [vmem:[#allocation24 + $0x28] sm:$0xff] }
 0x336   : > { %v1130_v3 = vsel %vm1129_vm7, %v2370_v51, %v1126_v0  ;;  %vm1323_vm7 = vmor %vm1321_vm6, %vm1322_vm5 }
 0x337   : > { %v1135_v6 = vsel %vm1132_vm8, %v1134_v2, %v1130_v3  ;;  %v1145_v11 = vsel %vm1144_vm11, %v2372_v53, %v1141_v4  ;;  %vm1326_vm8 = vcmp.eq.f32.partialorder %v1325_v35, 8.507059e+37  ;;  %1616 = vmatpush.msrb.mxu3 %v2133_v50  ;;  %v2128_v2 = vld [vmem:[%s3574_s30 + $0x28] sm:$0xff]  ;;  %1533 = vmatpush.msra.mxu0 %v1518_v1  ;;  %v1517_v4 = vld [vmem:[#allocation24 + $0x10] sm:$0xff] }
 0x338   : > { %v1136_v8 = vmul.f32 %v2360_v26, %v1135_v6  ;;  %v1150_v14 = vsel %vm1147_vm12, %v1149_v13, %v1145_v11  ;;  %v1319_v26 = vmul.f32 %v2374_v5, %v1318_v16 }
 0x339   : > { %v1151_v20 = vmul.f32 %v3323_v28, %v1150_v14  ;;  %v1328_v28 = vor.u32 1.1754944e-38, %v1327_v33  ;;  %1617 = vmatpush.msrb.mxu3 %v2132_v52  ;;  %1534 = vmatpush.msra.mxu0 %v1517_v4  ;;  %v2142_v33 = vld [vmem:[%s3574_s30 + $0x50] sm:$0xff] }
 0x33a   : > { %1154 = vperm.xlu0 %2338, %v1136_v8   ;;  %v1320_v30 = vadd.f32 %v2374_v5, %v1319_v26  ;;  %2124 = vmatmul.msk.f32.vlgmr.msra.gmra.mxu3 %vm994_vm1, %v989_v40 }
 0x33c   : > { %v1324_v36 = vsel %vm1323_vm7, %v2374_v5, %v1320_v30  ;;  %v2143_v30 = vld [vmem:[%s3574_s30 + $0x58] sm:$0xff] }
 0x33d   : > { %v1329_v37 = vsel %vm1326_vm8, %v1328_v28, %v1324_v36  ;;  %v2140_v28 = vld [vmem:[%s3574_s30 + $0x40] sm:$0xff] }
 0x33e   : > { %v1330_v38 = vmul.f32 %v3329_v32, %v1329_v37  ;;  %v1359_v32 = vld [vmem:[%s3573_s0] sm:$0xff] }
 0x33f   : > { %1381 = vmatpush.msrb.mxu1 %v1359_v32 }
 0x341   : > { %1490 = vmatpush.msra.mxu1 %v2122_v45  ;;  %v1623_v45 = vld [vmem:[#allocation24 + $0x20] sm:$0xff] }
 0x342   : > { %1159 = vperm.xlu0 %2338, %v1151_v20   ;;  %2137 = vmatmul.msk.f32.vlgmr.msrb.gmra.mxu3 %vm994_vm1, %v989_v40 }
 0x343   : > { %1491 = vmatpush.msra.mxu1 %v2121_v49  ;;  %v2346_v49 = vld [vmem:[#allocation26] ss:$0 sm:$0xff] }
 0x34a   : > { %1333 = vperm.xlu0 %2338, %v1315_v34  }
 0x352   : > { %1338 = vperm.xlu0 %2338, %v1330_v38  }
 0x3ac   : > { %v1155_v46 = vpop.permute.xlu0 %1154 }
 0x3ad   : > { %v1162_v47 = vmul.f32 %v1155_v46, %v3278_v15  ;;  %v1443_v15 = vld [vmem:[%s3574_s30 + $0x8] sm:$0xff]  ;;  %v1732_v62 = vperm.slane %v1155_v46, %v3313_v61 }
 0x3ae   : > { %1464 = vmatpush.msrb.mxu2 %v1443_v15 }
 0x3af   : > { %v1164_v51 = vsel %vm994_vm1, %v1162_v47, 0.0 }
 0x3b0   : > { %v1165_v53 = vrot.slane %v1164_v51, 4  ;;  %1465 = vmatpush.msrb.mxu2 %v1442_v54 }
 0x3b1   : > { %2118 = vmatmul.msk.f32.vlgmr.msrb.gmra.mxu2 %vm1032_vm2, %v3285_v18 }
 0x3b2   : > { %v1166_v55 = vadd.f32 %v1165_v53, %v1164_v51  ;;  %1568 = vmatpush.msra.mxu2 %v2130_v58  ;;  %v2345_v51 = vld [vmem:[%s3575_s7] ss:$0 sm:$0xff]  ;;  %v2348_v58 = vld [vmem:[#allocation26 + $0x1] ss:$0 sm:$0xff] }
 0x3b4   : > { %v1160_v60 = vpop.permute.xlu0 %1159  ;;  %v1167_v3 = vrot.slane %v1166_v55, 2  ;;  %1569 = vmatpush.msra.mxu2 %v2129_v59 }
 0x3b5   : > { %v1163_v63 = vmul.f32 %v1160_v60, %v3296_v23  ;;  %v1733_v0 = vperm.slane %v1160_v60, %v3313_v61  ;;  %v2127_v23 = vld [vmem:[%s3574_s30 + $0x20] sm:$0xff]  ;;  %v1406_v47 = vpop.f32.mrf.mxu3 }
 0x3b6   : > { %1570 = vmatpush.msra.mxu2 %v2128_v2  ;;  %v1168_v61 = vadd.f32 %v1167_v3, %v1166_v55 }
 0x3b7   : > { %v1171_v5 = vsel %vm994_vm1, %v1163_v63, 0.0  ;;  %v1734_v6 = vsel %vm1084_vm3, %v1733_v0, %v1732_v62  ;;  %v2347_v63 = vld [vmem:[%s3575_s7 + $0x1] ss:$0 sm:$0xff] }
 0x3b8   : > { %v1172_v7 = vrot.slane %v1171_v5, 4  ;;  %1736 = vst.msk [vmem:[#allocation33] sm:$0x3] %vm1087_vm4, %v1734_v6  ;;  %1571 = vmatpush.msra.mxu2 %v2127_v23  ;;  %v1169_v12 = vrot.slane %v1168_v61, 1 }
 0x3b9   : > { %2131 = vmatmul.msk.f32.vlgmr.msra.gmra.mxu2 %vm1032_vm2, %v3285_v18 }
 0x3ba   : > { %v1173_v8 = vadd.f32 %v1172_v7, %v1171_v5  ;;  %v1170_v20 = vadd.f32 %v1169_v12, %v1168_v61  ;;  %1674 = vmatpush.msrb.mxu2 %v2143_v30  ;;  %v2350_v12 = vld [vmem:[#allocation26 + $0x2] ss:$0 sm:$0xff] }
 0x3bc   : > { %v1174_v9 = vrot.slane %v1173_v8, 2  ;;  %v1334_v10 = vpop.permute.xlu0 %1333  ;;  %1675 = vmatpush.msrb.mxu2 %v2142_v33 }
 0x3bd   : > { %v1341_v11 = vmul.f32 %v1334_v10, %v3290_v22  ;;  %v2134_v22 = vld [vmem:[%s3573_s0 + $0x20] sm:$0xff]  ;;  %v1513_v56 = vpop.f32.mrf.mxu3 }
 0x3be   : > { %v1175_v13 = vadd.f32 %v1174_v9, %v1173_v8 }
 0x3bf   : > { %v1343_v14 = vsel %vm994_vm1, %v1341_v11, 0.0 }
 0x3c0   : > { %v1176_v16 = vrot.slane %v1175_v13, 1  ;;  %v1344_v17 = vrot.slane %v1343_v14, 4 }
 0x3c2   : > { %v1345_v19 = vadd.f32 %v1344_v17, %v1343_v14  ;;  %v1177_v21 = vadd.f32 %v1176_v16, %v1175_v13 }
 0x3c4   : > { %v1339_v26 = vpop.permute.xlu0 %1338  ;;  %v1363_v27 = vsel %vm1084_vm3, %v1177_v21, %v1170_v20  ;;  %v1346_v34 = vrot.slane %v1345_v19, 2 }
 0x3c5   : > { %v1342_v29 = vmul.f32 %v1339_v26, %v3305_v24  ;;  %2115 = vmatmul.msk.f32.vlgmr.msrb.gmra.mxu1 %vm994_vm1, %v1363_v27  ;;  %v2141_v24 = vld [vmem:[%s3574_s30 + $0x48] sm:$0xff]  ;;  %v1619_v11 = vpop.f32.mrf.mxu3  ;;  %v2349_v26 = vld [vmem:[%s3575_s7 + $0x2] ss:$0 sm:$0xff] }
 0x3c6   : > { %1596 = vmatpush.msrb.mxu1 %v2135_v25  ;;  %v1347_v37 = vadd.f32 %v1346_v34, %v1345_v19  ;;  %1676 = vmatpush.msrb.mxu2 %v2141_v24 }
 0x3c7   : > { %v1350_v35 = vsel %vm994_vm1, %v1342_v29, 0.0 }
 0x3c8   : > { %v1351_v36 = vrot.slane %v1350_v35, 4  ;;  %1597 = vmatpush.msrb.mxu1 %v2134_v22  ;;  %1677 = vmatpush.msrb.mxu2 %v2140_v28  ;;  %v1348_v31 = vrot.slane %v1347_v37, 1 }
 0x3c9   : > { %2144 = vmatmul.msk.f32.vlgmr.msrb.gmra.mxu2 %vm1032_vm2, %v3285_v18 }
 0x3ca   : > { %v1352_v38 = vadd.f32 %v1351_v36, %v1350_v35  ;;  %v1349_v32 = vadd.f32 %v1348_v31, %v1347_v37 }
 0x3cc   : > { %v1353_v39 = vrot.slane %v1352_v38, 2 }
 0x3cd   : > { %2123 = vmatmul.msk.f32.vlgmr.msra.gmra.mxu1 %vm994_vm1, %v1363_v27 }
 0x3ce   : > { %v1354_v40 = vadd.f32 %v1353_v39, %v1352_v38 }
 0x3d0   : > { %v1355_v41 = vrot.slane %v1354_v40, 1 }
 0x3d2   : > { %v1356_v42 = vadd.f32 %v1355_v41, %v1354_v40 }
 0x3d4   : > { %v1413_v44 = vsel %vm1084_vm3, %v1356_v42, %v1349_v32 }
 0x3d5   : > { %2117 = vmatmul.msk.f32.vlgmr.msrb.gmra.mxu0 %vm994_vm1, %v1413_v44  ;;  %2136 = vmatmul.msk.f32.vlgmr.msrb.gmra.mxu1 %vm994_vm1, %v1363_v27 }
 0x3d6   : > { %1639 = vmatpush.msrb.mxu0 %v1624_v43 }
 0x3d8   : > { %1640 = vmatpush.msrb.mxu0 %v1623_v45 }
 0x3dd   : > { %2125 = vmatmul.msk.f32.vlgmr.msra.gmra.mxu0 %vm994_vm1, %v1413_v44 }
 0x3e5   : > { %2138 = vmatmul.msk.f32.vlgmr.msrb.gmra.mxu0 %vm994_vm1, %v1413_v44 }
 0x434   : > { %v1467_v48 = vpop.f32.mrf.mxu2 }
 0x435   : > { %v1468_v53 = vadd.f32 %v2346_v49, %v1467_v48 }
 0x43c   : > { %v1573_v59 = vpop.f32.mrf.mxu2 }
 0x43d   : > { %v1574_v2 = vadd.f32 %v2348_v58, %v1573_v59 }
 0x442   : > { %v1383_v46 = vpop.f32.mrf.mxu1 }
 0x443   : > { %v1407_v50 = vadd.f32 %v1406_v47, %v1383_v46 }
 0x44a   : > { %v1493_v55 = vpop.f32.mrf.mxu1 }
 0x44b   : > { %v1514_v60 = vadd.f32 %v1513_v56, %v1493_v55 }
 0x44c   : > { %v1679_v16 = vpop.f32.mrf.mxu2 }
 0x44d   : > { %v1680_v27 = vadd.f32 %v2350_v12, %v1679_v16 }
 0x452   : > { %v1433_v15 = vpop.f32.mrf.mxu0  ;;  %v1599_v10 = vpop.f32.mrf.mxu1 }
 0x453   : > { %v1436_v52 = vadd.f32 %v1433_v15, %v1407_v50  ;;  %v1620_v19 = vadd.f32 %v1619_v11, %v1599_v10 }
 0x455   : > { %v1441_v54 = vadd.f32 %v2345_v51, %v1436_v52 }
 0x457   : > { %v1682_v57 = vadd.f32 %v1468_v53, %v1441_v54 }
 0x459   : > { %v2145_v62 = vmul.f32 -1.442695, %v1682_v57 }
 0x45a   : > { %v1536_v0 = vpop.f32.mrf.mxu0 }
 0x45b   : > { %2375 = vpow2.f32 %v2145_v62  ;;  %v1539_v1 = vadd.f32 %v1536_v0, %v1514_v60 }
 0x45d   : > { %v1545_v3 = vadd.f32 %v2347_v63, %v1539_v1 }
 0x45f   : > { %v1702_v4 = vadd.f32 %v1574_v2, %v1545_v3 }
 0x461   : > { %v2376_v5 = vpop.eup %2375  ;;  %v2146_v6 = vmul.f32 -1.442695, %v1702_v4 }
 0x462   : > { %v1686_v23 = vadd.f32 1.0, %v2376_v5  ;;  %v1642_v14 = vpop.f32.mrf.mxu0 }
 0x463   : > { %2377 = vpow2.f32 %v2146_v6  ;;  %v1645_v25 = vadd.f32 %v1642_v14, %v1620_v19 }
 0x464   : > { %2379 = vrcp.f32 %v1686_v23  ;;  %v1698_v17 = vand.u32 2147483648, %v1686_v23  ;;  %v1696_v21 = vand.u32 2147483647, %v1686_v23  ;;  %vm1692_vm2 = vweird.f32 %v1686_v23 }
 0x465   : > { %v1651_v36 = vadd.f32 %v2349_v26, %v1645_v25 }
 0x466   : > { %v1699_v30 = vor.u32 1.1754944e-38, %v1698_v17  ;;  %vm1697_vm4 = vcmp.eq.f32.partialorder %v1696_v21, 8.507059e+37 }
 0x469   : > { %v2378_v7 = vpop.eup %2377 }
 0x46a   : > { %v2380_v61 = vpop.eup %2379  ;;  %v1706_v8 = vadd.f32 1.0, %v2378_v7 }
 0x46b   : > { %v1688_v9 = vmul.f32 %v2380_v61, %v1686_v23  ;;  %vm1693_vm1 = vweird.f32 %v2380_v61 }
 0x46c   : > { %2381 = vrcp.f32 %v1706_v8  ;;  %vm1694_vm3 = vmor %vm1692_vm2, %vm1693_vm1  ;;  %v1718_v37 = vand.u32 2147483648, %v1706_v8  ;;  %v1716_v39 = vand.u32 2147483647, %v1706_v8  ;;  %vm1712_vm10 = vweird.f32 %v1706_v8 }
 0x46d   : > { %v1689_v13 = vsub.f32 1.0, %v1688_v9 }
 0x46e   : > { %v1719_v41 = vor.u32 1.1754944e-38, %v1718_v37  ;;  %vm1717_vm12 = vcmp.eq.f32.partialorder %v1716_v39, 8.507059e+37 }
 0x46f   : > { %v1690_v20 = vmul.f32 %v2380_v61, %v1689_v13 }
 0x471   : > { %v1691_v29 = vadd.f32 %v2380_v61, %v1690_v20 }
 0x472   : > { %v2382_v22 = vpop.eup %2381 }
 0x473   : > { %v1708_v33 = vmul.f32 %v2382_v22, %v1706_v8  ;;  %v1695_v34 = vsel %vm1694_vm3, %v2380_v61, %v1691_v29  ;;  %vm1713_vm9 = vweird.f32 %v2382_v22 }
 0x474   : > { %v1700_v35 = vsel %vm1697_vm4, %v1699_v30, %v1695_v34  ;;  %vm1714_vm11 = vmor %vm1712_vm10, %vm1713_vm9 }
 0x475   : > { %v1709_v24 = vsub.f32 1.0, %v1708_v33  ;;  %v1722_v28 = vmul.f32 %v1700_v35, %v1680_v27 }
 0x477   : > { %v1710_v38 = vmul.f32 %v2382_v22, %v1709_v24  ;;  %v1723_v31 = vadd.f32 %v1722_v28, %v1651_v36 }
 0x479   : > { %v1711_v40 = vadd.f32 %v2382_v22, %v1710_v38  ;;  %2383 = vtanh.f32 %v1723_v31 }
 0x47b   : > { %v1715_v32 = vsel %vm1714_vm11, %v2382_v22, %v1711_v40 }
 0x47c   : > { %v1720_v42 = vsel %vm1717_vm12, %v1719_v41, %v1715_v32 }
 0x47d   : > { %v1725_v43 = vsub.f32 1.0, %v1720_v42  ;;  %v1727_v46 = vmul.f32 %v1720_v42, %v3285_v18 }
 0x47f   : > { %v2384_v44 = vpop.eup %2383 }
 0x480   : > { %v1726_v45 = vmul.f32 %v2384_v44, %v1725_v43 }
 0x482   : > { %v1728_v47 = vadd.f32 %v1727_v46, %v1726_v45 }
 0x484   : > { %1730 = vst.msk [vmem:[#allocation4] sm:$0x3] %vm1729_vm13, %v1728_v47 }
 0x485   : > { %1731 = vst.msk [vmem:[#allocation30] sm:$0x3] %vm1729_vm13, %v1728_v47 }
 0x486 PF: > { %v1744_v48 = vld [vmem:[%s3253_s22 + $0x18] sm:$0xff]  ;;  %v1743_v49 = vld [vmem:[%s3253_s22 + $0x10] sm:$0xff]  ;;  %v1742_v50 = vld [vmem:[%s3253_s22 + $0x8] sm:$0xff]  ;;  %vm1749_vm14 = vcmask 261120   ;;  %s2148_s14 = sshll.u32 %s3089_s2, 7  ;;  %vm1780_vm15 = vcmask 1041408  }
 0x487   : > { %1765 = vmatpush.msra.mxu0 %v1744_v48  ;;  %v1741_v51 = vld [vmem:[%s3253_s22] sm:$0xff]  ;;  %s1774_s16 = sshra.s32 %s2148_s14, 7  ;;  %v2386_v18 = vld [vmem:[%s845_s24] ss:$0 sm:$0xff]  ;;  %v2941_v55 = vmov 0   ;;  %vm1802_vm0 = vcmask 1024  }
 0x488   : > { %s2149_s3 = sshll.u32 %s1774_s16, 1  ;;  %2385 = vset.pattern.permute.xlu0 %v2941_v55  ;;  %v1779_v56 = vld [vmem:[#allocation5] sm:$0x3]  ;;  %v1785_v4 = vld [vmem:[#allocation6] sm:$0x3]  ;;  %p2150_p4 = scmp.ne.s32.totalorder %s3089_s2, 1 }
 0x489   : > { %1766 = vmatpush.msra.mxu0 %v1743_v49  ;;  %s1777_s25 = scalar_lea.vmem [#allocation31], %s2149_s3 }
 0x48b   : > { %1767 = vmatpush.msra.mxu0 %v1742_v50  ;;  %v1740_v15 = vld [vmem:[#allocation4] sm:$0x3] }
 0x48d   : > { %1768 = vmatpush.msra.mxu0 %v1741_v51 }
 0x48e   : > { %2147 = vmatmul.msk.f32.vlgmr.msra.gmra.mxu0 %vm1749_vm14, %v1740_v15 }
 0x50b   : > { %v1770_v52 = vpop.f32.mrf.mxu0 }
 0x50c   : > { %v1771_v53 = vadd.f32 %v2386_v18, %v1770_v52 }
 0x50e   : > { %1778 = vst [vmem:[%s1777_s25] sm:$0x3] %v1771_v53  ;;  %v1781_v54 = vsel %vm1780_vm15, %v1771_v53, -inf }
 0x50f   : > { %1782 = vmax.xlane.f32.xlu0 %v1781_v54 }
 0x582   : > { %v1783_v57 = vpop.xlane.xlu0 %1782 }
 0x583   : > { %v1784_v58 = vmax.f32 %v1779_v56, %v1783_v57 }
 0x585   : > { %v1786_v59 = vsub.f32 %v1779_v56, %v1784_v58  ;;  %1804 = vst.msk [vmem:[#allocation5] sm:$0x3] %vm1802_vm0, %v1784_v58  ;;  %1792 = vperm.xlu0 %2385, %v1784_v58  }
 0x587   : > { %v1787_v2 = vmul.f32 1.442695, %v1786_v59 }
 0x5f7   : > { %v1793_v60 = vpop.permute.xlu0 %1792 }
 0x5f8   : > { %v1795_v62 = vsub.f32 %v1771_v53, %v1793_v60 }
 0x5fa   : > { %v1796_v63 = vmul.f32 1.442695, %v1795_v62 }
 0x5fc   : > { %2387 = vpow2.f32 %v1796_v63 }
 0x5fd   : > { %2389 = vpow2.f32 %v1787_v2 }
 0x602   : > { %v2388_v0 = vpop.eup %2387 }
 0x603   : > { %v1798_v1 = vsel %vm1780_vm15, %v2388_v0, 0.0  ;;  %v2390_v3 = vpop.eup %2389 }
 0x604   : > { %1799 = vadd.xlane.f32.xlu1 %v1798_v1  ;;  %v1789_v5 = vmul.f32 %v2390_v3, %v1785_v4 }
 0x676   : > { %1808 = sbr.rel (%p2150_p4) target bundleno = 1797 (0x705), region = 250 }
 0x677   : > { %v1800_v6 = vpop.xlane.xlu1 %1799 }
 0x678   : > { %v1801_v23 = vadd.f32 %v1800_v6, %v1789_v5 }
 0x67a   : > { %1803 = vst.msk [vmem:[#allocation6] sm:$0x3] %vm1802_vm0, %v1801_v23 }
 0x67b   : > { %v2942_v61 = vmov 0   ;;  %v1809_v9 = vld [vmem:[#allocation5] sm:$0x3]  ;;  %v2943_v12 = vmov 269488144  }
 0x67c   : > { %2391 = vset.pattern.permute.xlu0 %v2942_v61  ;;  %v1820_v13 = vunpack.c.l.s4 %v2943_v12  ;;  %v1814_v16 = vld [vmem:[#allocation31] sm:$0xf] }
 0x67e   : > { %v1821_v14 = vunpack.c.0.s8 %v1820_v13 }
 0x681   : > { %v1810_v7 = vld [vmem:[#allocation6] sm:$0x3] }
 0x682   : > { %2392 = vlog2.f32 %v1810_v7 }
 0x688   : > { %v2393_v8 = vpop.eup %2392 }
 0x689   : > { %v1812_v10 = vmul.f32 0.6931472, %v2393_v8 }
 0x68b   : > { %v1813_v11 = vadd.f32 %v1812_v10, %v1809_v9 }
 0x68d   : > { %1817 = vperm.xlu0 %2391, %v1813_v11  }
 0x6ff   : > { %v1818_v17 = vpop.permute.xlu0 %1817 }
 0x700   : > { %v1822_v19 = vperm.slane %v1818_v17, %v1821_v14 }
 0x702   : > { %v1824_v20 = vsub.f32 %v1814_v16, %v1822_v19 }
 0x704   : > { %1825 = vst [vmem:[#allocation31] sm:$0xf] %v1824_v20 }
 0x705 PF: > { %p2275_p5 = scmp.eq.s32.totalorder %s3089_s2, 1  ;;  %s2944_s29 = smov [#allocation31]  }
 0x706   : > { %s1844_s22 = sshll.u32 %s2944_s29, 4  ;;  %s3576_s17 = sld [smem:[#allocation65_spill]]  ;;  %s1845_s22 = int_to_ptr.vmem [resolvable:$true] %s1844_s22 }
 0x707   : > { %s3577_s21 = sld [smem:[#allocation64_spill]]  ;;  %s2945_s16 = smov [#allocation30]  }
 0x708   : > { %s1832_s3 = sshll.u32 %s2945_s16, 4  ;;  %s2946_s25 = smov [#allocation33]   ;;  %s1833_s3 = int_to_ptr.vmem [resolvable:$true] %s1832_s3 }
 0x709   : > { %s1856_s29 = sshll.u32 %s2946_s25, 4  ;;  %s1857_s29 = int_to_ptr.vmem [resolvable:$true] %s1856_s29 }
 0x70c   : > { %s1846_s28 = sshll.u32 %s3576_s17, 4  ;;  %s3578_s17 = sld [smem:[#allocation66_spill]]  ;;  %s1847_s28 = int_to_ptr.hbm [resolvable:$true] %s1846_s28 }
 0x70d   : > { %2210 = dma.vmem_to_hbm [thread:$0]  (%p2275_p5), %s1845_s22, 64, %s1847_s28, [#allocation32]  }
 0x70e   : > { %s1834_s14 = sshll.u32 %s3577_s21, 4  ;;  %s1835_s14 = int_to_ptr.hbm [resolvable:$true] %s1834_s14 }
 0x70f   : > { %2208 = dma.vmem_to_hbm [thread:$0]  (%p2275_p5), %s1833_s3, 32, %s1835_s14, [#allocation11]  }
 0x712   : > { %s1858_s0 = sshll.u32 %s3578_s17, 4  ;;  %s1859_s0 = int_to_ptr.hbm [resolvable:$true] %s1858_s0 }
 0x713   : > { %2212 = dma.vmem_to_hbm [thread:$0]  (%p2275_p5), %s1857_s29, 32, %s1859_s0, [#allocation32]  }
 0x714   : > { %2899 = dma.done.wait (%p2275_p5), [#allocation11], 32  }
 0x715   : > { %2901 = vsyncadd (%p2275_p5), [#allocation11], 4294967264 }
 0x716   : > { %2903 = dma.done.wait (%p2275_p5), [#allocation32], 96  }
 0x717   : > { %2905 = vsyncadd (%p2275_p5), [#allocation32], 4294967200 }
 0x718 PF: > { %s3579_s17 = sld [smem:[#allocation48_spill]]  ;;  %s3581_s5 = smov %s2912_s1 }
 0x719   : > { %s3580_s22 = sld [smem:[#allocation49_spill]]  ;;  %s3582_s1 = smov %s2916_s26 }
 0x71e   : > { %p50_p8 = scmp.ge.s32.totalorder %s3579_s17, 4  }
 0x71f   : > { %s3583_s26 = smov %s3580_s22 }
 0x720   :  { %52 = sbr.rel (!%p50_p8) target bundleno = 39 (0x27), region = 334 }
 0x725   :  { %1882 = vsyncpa [#allocation10], 1 }
 0x726   :  { %1884 = vsyncpa [#allocation10 + $0x1], 1 }
 0x727   :  { %1885 = vsyncpa [#allocation13], 1 }
 0x728   :  { %1886 = vsyncpa [#allocation16], 1 }
 0x729   :  { %1887 = vsyncpa [#allocation19], 1 }
 0x72a   :  { %1888 = vsyncpa [#allocation22], 1 }
 0x72b   :  { %1889 = vsyncpa [#allocation25], 1 }
 0x72c   :  { %1890 = vsyncpa [#allocation29], 1 }
 0x72d   :  { %1892 = vsyncpa [#allocation29 + $0x1], 1 }
 0x72e   :  { %1893 = vsyncpa [#allocation11], 1 }
 0x72f   :  { %1895 = vsyncpa [#allocation11 + $0x1], 1 }
 0x730   :  { %1896 = vsyncpa [#allocation32], 1 }
 0x731   :  { %1897 = vsyncmov [#allocation3] }
 0x734   :  { %s1898_s2 = vpop.sfrf %1897 }
 0x735   :  { %p2159_p9 = scmp.ne.s32.totalorder %s1898_s2, 0 }
 0x737   :  { %1902 = shalt.err (%p2159_p9)  }
 0x738   :  { %1904 = vsyncmov [#allocation3 + $0x1] }
 0x73b   :  { %s1905_s0 = vpop.sfrf %1904 }
 0x73c   :  { %p2160_p10 = scmp.ne.s32.totalorder %s1905_s0, 0 }
 0x73e   :  { %1909 = shalt.err (%p2160_p10)  }

</bundles_post_ra>
